<compile_context>
chip_gen: v6e
topology: v6e:2x2x1
jax: 0.10.0
libtpu: 0.0.40
codegen_flags: <defaults>
</compile_context>

<pallas_src>
import functools

import jax
import jax.numpy as jnp
from jax.experimental import pallas as pl
from jax.experimental.pallas import tpu as pltpu


def _round_up(x, m):
    return ((x + m - 1) // m) * m


# ---------------------------------------------------------------------------
# Fused Pallas kernel (closure over static dims)
# ---------------------------------------------------------------------------

def _make_v2_kernel(B, S, Tin, Din, C, G, P3, Pf, offs, out_w):
    o_w1t, o_w1av, o_w2, o_pf1, o_pf2, o_w3h, o_w3f = offs

    def kernel(text_ref, avx_ref, gw_ref, hw_ref, bias_ref, rs_ref, out_ref):
        f32 = jnp.float32

        def mm(x, w):
            return jnp.dot(x, w, preferred_element_type=f32)

        bias = bias_ref[...]                                        # (8, >=G)

        # ---- ALL x-dependent LSTM gate pre-activations in ONE matmul -------
        # avx rows are time-major (row = t*B + b); feature columns hold
        # [audio[t] | audio[S-1-t] | video[t] | video[S-1-t]], so forward and
        # reverse chains both read the correct timestep from the same row.
        gx_all = mm(avx_ref[...], gw_ref[0:Din, :]) + bias[0:1, 0:G]   # (S*B, G)

        whh = gw_ref[Din:Din + C, :]                                # (C, 4C) block-diag

        # ---- serial recurrence: all 4 chains advance together ---------------
        # packed state columns: [audio_fwd | audio_rev | video_fwd | video_rev]
        # packed gate columns (G = 4C): [ i | f | o | g ], each C wide.
        h = jnp.zeros((B, C), f32)
        c = jnp.zeros((B, C), f32)
        for t in range(S):                       # S small & static -> unrolled
            gates = gx_all[t * B:(t + 1) * B, :] + mm(h, whh)       # (B, 4C)
            sig = jax.nn.sigmoid(gates[:, 0:3 * C])                 # i|f|o at once
            g_g = jnp.tanh(gates[:, 3 * C:4 * C])
            i_g = sig[:, 0 * C:1 * C]
            f_g = sig[:, 1 * C:2 * C]
            o_g = sig[:, 2 * C:3 * C]
            c = f_g * c + i_g * g_g
            h = o_g * jnp.tanh(c)
        # h == [audio bi-LSTM output | video bi-LSTM output], lane-adjacent.

        # ---- per-modality heads packed into two lane-dense matmuls ----------
        # (tliner is folded into the text block of w1; dropouts are identity)
        w1t = hw_ref[o_w1t:o_w1t + Tin, 0:P3]
        w1av = hw_ref[o_w1av:o_w1av + C, 0:P3]
        h1 = jnp.maximum(
            mm(text_ref[...], w1t) + mm(h, w1av) + bias[1:2, 0:P3], 0.0)
        w2 = hw_ref[o_w2:o_w2 + P3, 0:P3]         # block-diagonal layer-2
        h2 = jnp.maximum(mm(h1, w2) + bias[2:3, 0:P3], 0.0)   # == fusion_cat

        # ---- fusion trunk (no activation, matching the reference) -----------
        f1 = mm(h2, hw_ref[o_pf1:o_pf1 + P3, 0:Pf]) + bias[3:4, 0:Pf]
        f2 = mm(f1, hw_ref[o_pf2:o_pf2 + Pf, 0:Pf]) + bias[4:5, 0:Pf]

        # ---- all four scalar outputs in one lane-packed projection ----------
        out4 = (mm(h2, hw_ref[o_w3h:o_w3h + P3, 0:4])
                + mm(f2, hw_ref[o_w3f:o_w3f + Pf, 0:4])
                + bias[5:6, 0:4])                                # cols [T,A,V,M]
        m_col = jax.nn.sigmoid(out4) * rs_ref[0] + rs_ref[1]
        col = jax.lax.broadcasted_iota(jnp.int32, out4.shape, 1)
        out4 = jnp.where(col == 3, m_col, out4)   # only M: sigmoid*range+shift

        # ---- single lane-dense packed output (one unmasked store, one DMA) --
        parts = [h2, f2, out4]
        rem = out_w - (P3 + Pf + 4)
        if rem > 0:
            parts.append(jnp.zeros((B, rem), f32))
        out_ref[...] = jnp.concatenate(parts, axis=1)

    return kernel


# ---------------------------------------------------------------------------
# Parameter construction (deterministic, synthetic)
# ---------------------------------------------------------------------------

def _init_linear(key, in_dim, out_dim, scale=0.1):
    kw, kb = jax.random.split(key)
    w = jax.random.normal(kw, (in_dim, out_dim), jnp.float32) * scale
    b = jax.random.normal(kb, (1, out_dim), jnp.float32) * scale
    return {"w": w, "b": b}


def _init_avsubnet(key, in_size, hidden, scale=0.1):
    ks = jax.random.split(key, 7)
    return {
        "proj_w": jax.random.normal(ks[0], (in_size, hidden), jnp.float32) * scale,
        "wih_f": jax.random.normal(ks[1], (hidden, 4 * hidden), jnp.float32) * scale,
        "whh_f": jax.random.normal(ks[2], (hidden, 4 * hidden), jnp.float32) * scale,
        "b_f": jax.random.normal(ks[3], (1, 4 * hidden), jnp.float32) * scale,
        "wih_r": jax.random.normal(ks[4], (hidden, 4 * hidden), jnp.float32) * scale,
        "whh_r": jax.random.normal(ks[5], (hidden, 4 * hidden), jnp.float32) * scale,
        "b_r": jax.random.normal(ks[6], (1, 4 * hidden), jnp.float32) * scale,
    }


def init_v2_params(key, dims):
    (text_in, audio_in, video_in,
     text_hidden, audio_hidden, video_hidden,
     post_text_dim, post_audio_dim, post_video_dim, post_fusion_out) = dims
    keys = jax.random.split(key, 16)
    p = {}
    p["tliner"] = _init_linear(keys[0], text_in, text_hidden)
    p["audio_model"] = _init_avsubnet(keys[1], audio_in, audio_hidden)
    p["video_model"] = _init_avsubnet(keys[2], video_in, video_hidden)
    p["post_text_layer_1"] = _init_linear(keys[3], text_hidden, post_text_dim)
    p["post_text_layer_2"] = _init_linear(keys[4], post_text_dim, post_text_dim)
    p["post_text_layer_3"] = _init_linear(keys[5], post_text_dim, 1)
    p["post_audio_layer_1"] = _init_linear(keys[6], 2 * audio_hidden, post_audio_dim)
    p["post_audio_layer_2"] = _init_linear(keys[7], post_audio_dim, post_audio_dim)
    p["post_audio_layer_3"] = _init_linear(keys[8], post_audio_dim, 1)
    p["post_video_layer_1"] = _init_linear(keys[9], 2 * video_hidden, post_video_dim)
    p["post_video_layer_2"] = _init_linear(keys[10], post_video_dim, post_video_dim)
    p["post_video_layer_3"] = _init_linear(keys[11], post_video_dim, 1)
    fusion_in = post_text_dim + post_audio_dim + post_video_dim
    p["post_fusion_layer_1"] = _init_linear(keys[12], fusion_in, post_fusion_out)
    p["post_fusion_layer_2"] = _init_linear(keys[13], post_fusion_out, post_fusion_out)
    p["post_fusion_layer_3"] = _init_linear(keys[14], post_fusion_out, 1)
    p["output_range"] = jnp.array([2.0], jnp.float32)
    p["output_shift"] = jnp.array([-1.0], jnp.float32)
    return p


# ---------------------------------------------------------------------------
# ONE-TIME weight packing (hoisted out of the per-call forward)
# ---------------------------------------------------------------------------

def pack_v2_params(params):
    f32 = jnp.float32
    tl = params["tliner"]
    am, vm = params["audio_model"], params["video_model"]
    pt1, pt2, pt3 = (params["post_text_layer_1"], params["post_text_layer_2"],
                     params["post_text_layer_3"])
    pa1, pa2, pa3 = (params["post_audio_layer_1"], params["post_audio_layer_2"],
                     params["post_audio_layer_3"])
    pv1, pv2, pv3 = (params["post_video_layer_1"], params["post_video_layer_2"],
                     params["post_video_layer_3"])
    pf1, pf2, pf3 = (params["post_fusion_layer_1"], params["post_fusion_layer_2"],
                     params["post_fusion_layer_3"])

    Tin = tl["w"].shape[0]
    Ha, Hv = am["whh_f"].shape[0], vm["whh_f"].shape[0]
    Ain, Vin = am["proj_w"].shape[0], vm["proj_w"].shape[0]
    Pt, Pa, Pv = pt1["w"].shape[1], pa1["w"].shape[1], pv1["w"].shape[1]
    Pf = pf1["w"].shape[1]
    P3 = Pt + Pa + Pv

    # chain order: [audio_fwd, audio_rev, video_fwd, video_rev]
    Hs = [Ha, Ha, Hv, Hv]
    C = sum(Hs)
    G = 4 * C
    hoff = [0, Ha, 2 * Ha, 2 * Ha + Hv]
    Ins = [Ain, Ain, Vin, Vin]
    Din = sum(Ins)
    xoff = [0, Ain, 2 * Ain, 2 * Ain + Vin]

    Tin_pad = _round_up(Tin, 8)
    Din_pad = _round_up(Din, 8)
    C_pad = _round_up(C, 8)

    # fold Conv1d(k=1, bias=False) projection into the LSTM input weights
    chain_wx = [jnp.dot(am["proj_w"], am["wih_f"]),
                jnp.dot(am["proj_w"], am["wih_r"]),
                jnp.dot(vm["proj_w"], vm["wih_f"]),
                jnp.dot(vm["proj_w"], vm["wih_r"])]
    chain_whh = [am["whh_f"], am["whh_r"], vm["whh_f"], vm["whh_r"]]
    # TODO(synk): sum b_ih + b_hh here when porting real PyTorch checkpoints.
    chain_b = [am["b_f"], am["b_r"], vm["b_f"], vm["b_r"]]

    # repack gate columns: per-chain (i,f,g,o) -> grouped [ i | f | o | g ]
    new_to_old_gate = (0, 1, 3, 2)

    xg_w = jnp.zeros((Din_pad, G), f32)
    whh_p = jnp.zeros((C, G), f32)
    gate_b = jnp.zeros((1, G), f32)
    for ci in range(4):
        H = Hs[ci]
        for gp, og in enumerate(new_to_old_gate):
            cs = gp * C + hoff[ci]
            xg_w = xg_w.at[xoff[ci]:xoff[ci] + Ins[ci], cs:cs + H].set(
                chain_wx[ci][:, og * H:(og + 1) * H])
            whh_p = whh_p.at[hoff[ci]:hoff[ci] + H, cs:cs + H].set(
                chain_whh[ci][:, og * H:(og + 1) * H])
            gate_b = gate_b.at[0:1, cs:cs + H].set(
                chain_b[ci][:, og * H:(og + 1) * H])

    # gate-weight slab: [ x->gates (Din_pad rows) ; whh (padded to C_pad rows) ]
    gw = jnp.concatenate(
        [xg_w, whh_p, jnp.zeros((C_pad - C, G), f32)], axis=0)

    # head-weight slab (row-stacked, 8-aligned piece starts, width = max width)
    WH = max(P3, Pf, 8)

    def _piece(w, rows_pad):
        r, cdim = w.shape
        out = jnp.zeros((rows_pad, WH), f32)
        return out.at[:r, :cdim].set(w)

    # fold tliner into post_text_layer_1 (text_h itself is not an output)
    w1t = jnp.zeros((Tin, P3), f32).at[:, 0:Pt].set(jnp.dot(tl["w"], pt1["w"]))
    b1_text = jnp.dot(tl["b"], pt1["w"]) + pt1["b"]          # (1, Pt)

    w1av = jnp.zeros((C, P3), f32)
    w1av = w1av.at[0:2 * Ha, Pt:Pt + Pa].set(pa1["w"])
    w1av = w1av.at[2 * Ha:C, Pt + Pa:P3].set(pv1["w"])

    w2 = jnp.zeros((P3, P3), f32)
    w2 = w2.at[0:Pt, 0:Pt].set(pt2["w"])
    w2 = w2.at[Pt:Pt + Pa, Pt:Pt + Pa].set(pa2["w"])
    w2 = w2.at[Pt + Pa:P3, Pt + Pa:P3].set(pv2["w"])

    w3h = jnp.zeros((P3, 4), f32)
    w3h = w3h.at[0:Pt, 0:1].set(pt3["w"])
    w3h = w3h.at[Pt:Pt + Pa, 1:2].set(pa3["w"])
    w3h = w3h.at[Pt + Pa:P3, 2:3].set(pv3["w"])
    w3f = jnp.zeros((Pf, 4), f32).at[:, 3:4].set(pf3["w"])

    pieces = [(w1t, Tin_pad), (w1av, C_pad), (w2, _round_up(P3, 8)),
              (pf1["w"], _round_up(P3, 8)), (pf2["w"], _round_up(Pf, 8)),
              (w3h, _round_up(P3, 8)), (w3f, _round_up(Pf, 8))]
    offs, off = [], 0
    for _, rp in pieces:
        offs.append(off)
        off += rp
    hw = jnp.concatenate([_piece(w, rp) for (w, rp) in pieces], axis=0)

    # bias slab (one row per bias vector)
    BW = max(G, P3, Pf, 8)
    bias = jnp.zeros((8, BW), f32)
    bias = bias.at[0, 0:G].set(gate_b[0])
    b1 = jnp.concatenate([b1_text, pa1["b"], pv1["b"]], axis=1)
    b2 = jnp.concatenate([pt2["b"], pa2["b"], pv2["b"]], axis=1)
    b3 = jnp.concatenate([pt3["b"], pa3["b"], pv3["b"], pf3["b"]], axis=1)
    bias = bias.at[1, 0:P3].set(b1[0])
    bias = bias.at[2, 0:P3].set(b2[0])
    bias = bias.at[3, 0:Pf].set(pf1["b"][0])
    bias = bias.at[4, 0:Pf].set(pf2["b"][0])
    bias = bias.at[5, 0:4].set(b3[0])

    rs = jnp.concatenate([params["output_range"],
                          params["output_shift"]]).astype(f32)

    packed = {"gw": gw, "hw": hw, "bias": bias, "rs": rs}
    meta = {"Tin": Tin, "Tin_pad": Tin_pad, "Ain": Ain, "Vin": Vin,
            "Din": Din, "Din_pad": Din_pad, "C": C, "G": G,
            "Pt": Pt, "Pa": Pa, "Pv": Pv, "P3": P3, "Pf": Pf,
            "head_offsets": tuple(offs)}
    return packed, meta


# ---------------------------------------------------------------------------
# Forward pass: tiny activation layout plumbing + single fused pallas_call
# ---------------------------------------------------------------------------

def v2_forward(meta, packed, text_x, audio_x, video_x, a_len, v_len):
    # TODO(synk): BertTextEncoder replaced by CLS-token passthrough.
    # a_len / v_len are unused by this forward (as in the reference module).
    del a_len, v_len
    f32 = jnp.float32
    B, S = audio_x.shape[0], audio_x.shape[1]
    # TODO(synk): the packed 4-chain recurrence assumes equal audio/video
    # sequence lengths; unequal lengths would need padding-aware masking.
    assert video_x.shape[1] == S

    Bp = max(8, _round_up(B, 8))
    Tin, Tin_pad = meta["Tin"], meta["Tin_pad"]
    Din, Din_pad = meta["Din"], meta["Din_pad"]
    C, G = meta["C"], meta["G"]
    Pt, Pa, Pv, P3, Pf = meta["Pt"], meta["Pa"], meta["Pv"], meta["P3"], meta["Pf"]
    out_w = _round_up(P3 + Pf + 4, 128)

    # --- activation layout plumbing (pure layout, no compute hoisted) ---
    text_cls = text_x[:, 0, :].astype(f32)
    text_cls = jnp.pad(text_cls, ((0, Bp - B), (0, Tin_pad - Tin)))

    a_rev = audio_x[:, ::-1, :]
    v_rev = video_x[:, ::-1, :]
    av = jnp.concatenate([audio_x, a_rev, video_x, v_rev], axis=-1).astype(f32)
    av = jnp.pad(av, ((0, Bp - B), (0, 0), (0, Din_pad - Din)))
    av_tm = jnp.transpose(av, (1, 0, 2)).reshape(S * Bp, Din_pad)   # time-major

    kernel = _make_v2_kernel(Bp, S, Tin_pad, Din_pad, C, G, P3, Pf,
                             meta["head_offsets"], out_w)

    vmem = pl.BlockSpec(memory_space=pltpu.MemorySpace.VMEM)
    smem = pl.BlockSpec(memory_space=pltpu.MemorySpace.SMEM)

    out = pl.pallas_call(
        kernel,
        out_shape=jax.ShapeDtypeStruct((Bp, out_w), f32),
        in_specs=[vmem, vmem, vmem, vmem, vmem, smem],
        out_specs=vmem,
    )(text_cls, av_tm, packed["gw"], packed["hw"], packed["bias"], packed["rs"])

    h2 = out[:B, 0:P3]                       # [x_t3 | x_a3 | x_v3] == fusion_cat
    f2 = out[:B, P3:P3 + Pf]                 # fusion_data (Feature_f)
    o4 = out[:B, P3 + Pf:P3 + Pf + 4]        # [T, A, V, M]
    return {
        "Feature_t": h2[:, 0:Pt],
        "Feature_a": h2[:, Pt:Pt + Pa],
        "Feature_v": h2[:, Pt + Pa:P3],
        "Feature_f": f2,
        "M": o4[:, 3:4],
        "T": o4[:, 0:1],
        "A": o4[:, 1:2],
        "V": o4[:, 2:3],
    }


# ---------------------------------------------------------------------------
# Driver
# ---------------------------------------------------------------------------

if __name__ == "__main__":
    B = 2
    S_TEXT, S_A, S_V = 8, 8, 8
    TEXT_IN, AUDIO_IN, VIDEO_IN = 32, 20, 12
    TEXT_HID, AUDIO_HID, VIDEO_HID = 32, 16, 16
    POST_T, POST_A, POST_V, POST_F = 16, 16, 16, 16

    key = jax.random.PRNGKey(0)
    k_par, k_t, k_a, k_v = jax.random.split(key, 4)

    params = init_v2_params(
        k_par,
        (TEXT_IN, AUDIO_IN, VIDEO_IN,
         TEXT_HID, AUDIO_HID, VIDEO_HID,
         POST_T, POST_A, POST_V, POST_F))

    # one-time packing (hoisted out of the per-call forward)
    packed, meta = pack_v2_params(params)
    packed = jax.tree_util.tree_map(jnp.asarray, packed)

    text_x = jax.random.normal(k_t, (B, S_TEXT, TEXT_IN), jnp.float32)
    audio_x = jax.random.normal(k_a, (B, S_A, AUDIO_IN), jnp.float32)
    video_x = jax.random.normal(k_v, (B, S_V, VIDEO_IN), jnp.float32)
    a_len = jnp.full((B,), S_A, jnp.int32)   # unused (matches the reference)
    v_len = jnp.full((B,), S_V, jnp.int32)

    fwd = jax.jit(functools.partial(v2_forward, meta))
    res = fwd(packed, text_x, audio_x, video_x, a_len, v_len)
    jax.block_until_ready(res)

    assert res["Feature_t"].shape == (B, POST_T)
    assert res["Feature_a"].shape == (B, POST_A)
    assert res["Feature_v"].shape == (B, POST_V)
    assert res["Feature_f"].shape == (B, POST_F)
    for k in ("M", "T", "A", "V"):
        assert res[k].shape == (B, 1)
        assert bool(jnp.isfinite(res[k]).all())
    for k in ("Feature_t", "Feature_a", "Feature_v", "Feature_f"):
        assert bool(jnp.isfinite(res[k]).all())
    # M must lie in sigmoid*2 - 1 range
    assert bool((res["M"] >= -1.0).all()) and bool((res["M"] <= 1.0).all())

    print("KERNEL_OK")
</pallas_src>

<mosaic_0001>
module attributes {stable_mosaic.version = 11 : i64} {
  func.func @kernel(%arg0: memref<8x32xf32, #tpu.memory_space<vmem>>, %arg1: memref<64x64xf32, #tpu.memory_space<vmem>>, %arg2: memref<128x256xf32, #tpu.memory_space<vmem>>, %arg3: memref<272x48xf32, #tpu.memory_space<vmem>>, %arg4: memref<8x256xf32, #tpu.memory_space<vmem>>, %arg5: memref<2xf32, #tpu.memory_space<smem>>, %arg6: memref<8x128xf32, #tpu.memory_space<vmem>>) attributes {dimension_semantics = [], scalar_prefetch = 0 : i64, scratch_operands = 0 : i64, tpu.core_type = #tpu.core_type<tc>} {
    %c0 = arith.constant 0 : index
    %c0_0 = arith.constant 0 : index
    %0 = vector.load %arg4[%c0, %c0_0] : memref<8x256xf32, #tpu.memory_space<vmem>>, vector<8x256xf32>
    %c0_1 = arith.constant 0 : index
    %c0_2 = arith.constant 0 : index
    %1 = vector.load %arg1[%c0_1, %c0_2] : memref<64x64xf32, #tpu.memory_space<vmem>>, vector<64x64xf32>
    %c0_3 = arith.constant 0 : index
    %c0_4 = arith.constant 0 : index
    %2 = vector.load %arg2[%c0_3, %c0_4] : memref<128x256xf32, #tpu.memory_space<vmem>>, vector<64x256xf32>
    %cst = arith.constant dense<0.000000e+00> : vector<64x256xf32>
    %3 = tpu.matmul %1, %2, %cst {dimension_numbers = #tpu.dot_dimension_numbers<[1], [0], [0], [1], [0, 0, 1, 1], [], []>} : vector<64x64xf32>, vector<64x256xf32>, vector<64x256xf32> -> vector<64x256xf32>
    %4 = vector.extract_strided_slice %0 {offsets = [0, 0], sizes = [1, 256], strides = [1, 1]} : vector<8x256xf32> to vector<1x256xf32>
    %5 = vector.broadcast %4 : vector<1x256xf32> to vector<64x256xf32>
    %6 = arith.addf %3, %5 : vector<64x256xf32>
    %c64 = arith.constant 64 : index
    %c0_5 = arith.constant 0 : index
    %7 = vector.load %arg2[%c64, %c0_5] : memref<128x256xf32, #tpu.memory_space<vmem>>, vector<64x256xf32>
    %cst_6 = arith.constant 0.000000e+00 : f32
    %8 = vector.broadcast %cst_6 : f32 to vector<8x64xf32>
    %cst_7 = arith.constant 0.000000e+00 : f32
    %9 = vector.broadcast %cst_7 : f32 to vector<8x64xf32>
    %10 = vector.extract_strided_slice %6 {offsets = [0, 0], sizes = [8, 256], strides = [1, 1]} : vector<64x256xf32> to vector<8x256xf32>
    %cst_8 = arith.constant dense<0.000000e+00> : vector<8x256xf32>
    %11 = tpu.matmul %8, %7, %cst_8 {dimension_numbers = #tpu.dot_dimension_numbers<[1], [0], [0], [1], [0, 0, 1, 1], [], []>} : vector<8x64xf32>, vector<64x256xf32>, vector<8x256xf32> -> vector<8x256xf32>
    %12 = arith.addf %10, %11 : vector<8x256xf32>
    %13 = vector.extract_strided_slice %12 {offsets = [0, 0], sizes = [8, 192], strides = [1, 1]} : vector<8x256xf32> to vector<8x192xf32>
    %14 = arith.negf %13 : vector<8x192xf32>
    %15 = math.exp %14 : vector<8x192xf32>
    %cst_9 = arith.constant 1.000000e+00 : f32
    %16 = vector.broadcast %cst_9 : f32 to vector<8x192xf32>
    %17 = arith.addf %16, %15 : vector<8x192xf32>
    %18 = arith.divf %16, %17 : vector<8x192xf32>
    %19 = vector.extract_strided_slice %12 {offsets = [0, 192], sizes = [8, 64], strides = [1, 1]} : vector<8x256xf32> to vector<8x64xf32>
    %20 = math.tanh %19 : vector<8x64xf32>
    %21 = vector.extract_strided_slice %18 {offsets = [0, 0], sizes = [8, 64], strides = [1, 1]} : vector<8x192xf32> to vector<8x64xf32>
    %22 = vector.extract_strided_slice %18 {offsets = [0, 64], sizes = [8, 64], strides = [1, 1]} : vector<8x192xf32> to vector<8x64xf32>
    %23 = vector.extract_strided_slice %18 {offsets = [0, 128], sizes = [8, 64], strides = [1, 1]} : vector<8x192xf32> to vector<8x64xf32>
    %24 = arith.mulf %22, %9 : vector<8x64xf32>
    %25 = arith.mulf %21, %20 : vector<8x64xf32>
    %26 = arith.addf %24, %25 : vector<8x64xf32>
    %27 = math.tanh %26 : vector<8x64xf32>
    %28 = arith.mulf %23, %27 : vector<8x64xf32>
    %29 = vector.extract_strided_slice %6 {offsets = [8, 0], sizes = [8, 256], strides = [1, 1]} : vector<64x256xf32> to vector<8x256xf32>
    %cst_10 = arith.constant dense<0.000000e+00> : vector<8x256xf32>
    %30 = tpu.matmul %28, %7, %cst_10 {dimension_numbers = #tpu.dot_dimension_numbers<[1], [0], [0], [1], [0, 0, 1, 1], [], []>} : vector<8x64xf32>, vector<64x256xf32>, vector<8x256xf32> -> vector<8x256xf32>
    %31 = arith.addf %29, %30 : vector<8x256xf32>
    %32 = vector.extract_strided_slice %31 {offsets = [0, 0], sizes = [8, 192], strides = [1, 1]} : vector<8x256xf32> to vector<8x192xf32>
    %33 = arith.negf %32 : vector<8x192xf32>
    %34 = math.exp %33 : vector<8x192xf32>
    %cst_11 = arith.constant 1.000000e+00 : f32
    %35 = vector.broadcast %cst_11 : f32 to vector<8x192xf32>
    %36 = arith.addf %35, %34 : vector<8x192xf32>
    %37 = arith.divf %35, %36 : vector<8x192xf32>
    %38 = vector.extract_strided_slice %31 {offsets = [0, 192], sizes = [8, 64], strides = [1, 1]} : vector<8x256xf32> to vector<8x64xf32>
    %39 = math.tanh %38 : vector<8x64xf32>
    %40 = vector.extract_strided_slice %37 {offsets = [0, 0], sizes = [8, 64], strides = [1, 1]} : vector<8x192xf32> to vector<8x64xf32>
    %41 = vector.extract_strided_slice %37 {offsets = [0, 64], sizes = [8, 64], strides = [1, 1]} : vector<8x192xf32> to vector<8x64xf32>
    %42 = vector.extract_strided_slice %37 {offsets = [0, 128], sizes = [8, 64], strides = [1, 1]} : vector<8x192xf32> to vector<8x64xf32>
    %43 = arith.mulf %41, %26 : vector<8x64xf32>
    %44 = arith.mulf %40, %39 : vector<8x64xf32>
    %45 = arith.addf %43, %44 : vector<8x64xf32>
    %46 = math.tanh %45 : vector<8x64xf32>
    %47 = arith.mulf %42, %46 : vector<8x64xf32>
    %48 = vector.extract_strided_slice %6 {offsets = [16, 0], sizes = [8, 256], strides = [1, 1]} : vector<64x256xf32> to vector<8x256xf32>
    %cst_12 = arith.constant dense<0.000000e+00> : vector<8x256xf32>
    %49 = tpu.matmul %47, %7, %cst_12 {dimension_numbers = #tpu.dot_dimension_numbers<[1], [0], [0], [1], [0, 0, 1, 1], [], []>} : vector<8x64xf32>, vector<64x256xf32>, vector<8x256xf32> -> vector<8x256xf32>
    %50 = arith.addf %48, %49 : vector<8x256xf32>
    %51 = vector.extract_strided_slice %50 {offsets = [0, 0], sizes = [8, 192], strides = [1, 1]} : vector<8x256xf32> to vector<8x192xf32>
    %52 = arith.negf %51 : vector<8x192xf32>
    %53 = math.exp %52 : vector<8x192xf32>
    %cst_13 = arith.constant 1.000000e+00 : f32
    %54 = vector.broadcast %cst_13 : f32 to vector<8x192xf32>
    %55 = arith.addf %54, %53 : vector<8x192xf32>
    %56 = arith.divf %54, %55 : vector<8x192xf32>
    %57 = vector.extract_strided_slice %50 {offsets = [0, 192], sizes = [8, 64], strides = [1, 1]} : vector<8x256xf32> to vector<8x64xf32>
    %58 = math.tanh %57 : vector<8x64xf32>
    %59 = vector.extract_strided_slice %56 {offsets = [0, 0], sizes = [8, 64], strides = [1, 1]} : vector<8x192xf32> to vector<8x64xf32>
    %60 = vector.extract_strided_slice %56 {offsets = [0, 64], sizes = [8, 64], strides = [1, 1]} : vector<8x192xf32> to vector<8x64xf32>
    %61 = vector.extract_strided_slice %56 {offsets = [0, 128], sizes = [8, 64], strides = [1, 1]} : vector<8x192xf32> to vector<8x64xf32>
    %62 = arith.mulf %60, %45 : vector<8x64xf32>
    %63 = arith.mulf %59, %58 : vector<8x64xf32>
    %64 = arith.addf %62, %63 : vector<8x64xf32>
    %65 = math.tanh %64 : vector<8x64xf32>
    %66 = arith.mulf %61, %65 : vector<8x64xf32>
    %67 = vector.extract_strided_slice %6 {offsets = [24, 0], sizes = [8, 256], strides = [1, 1]} : vector<64x256xf32> to vector<8x256xf32>
    %cst_14 = arith.constant dense<0.000000e+00> : vector<8x256xf32>
    %68 = tpu.matmul %66, %7, %cst_14 {dimension_numbers = #tpu.dot_dimension_numbers<[1], [0], [0], [1], [0, 0, 1, 1], [], []>} : vector<8x64xf32>, vector<64x256xf32>, vector<8x256xf32> -> vector<8x256xf32>
    %69 = arith.addf %67, %68 : vector<8x256xf32>
    %70 = vector.extract_strided_slice %69 {offsets = [0, 0], sizes = [8, 192], strides = [1, 1]} : vector<8x256xf32> to vector<8x192xf32>
    %71 = arith.negf %70 : vector<8x192xf32>
    %72 = math.exp %71 : vector<8x192xf32>
    %cst_15 = arith.constant 1.000000e+00 : f32
    %73 = vector.broadcast %cst_15 : f32 to vector<8x192xf32>
    %74 = arith.addf %73, %72 : vector<8x192xf32>
    %75 = arith.divf %73, %74 : vector<8x192xf32>
    %76 = vector.extract_strided_slice %69 {offsets = [0, 192], sizes = [8, 64], strides = [1, 1]} : vector<8x256xf32> to vector<8x64xf32>
    %77 = math.tanh %76 : vector<8x64xf32>
    %78 = vector.extract_strided_slice %75 {offsets = [0, 0], sizes = [8, 64], strides = [1, 1]} : vector<8x192xf32> to vector<8x64xf32>
    %79 = vector.extract_strided_slice %75 {offsets = [0, 64], sizes = [8, 64], strides = [1, 1]} : vector<8x192xf32> to vector<8x64xf32>
    %80 = vector.extract_strided_slice %75 {offsets = [0, 128], sizes = [8, 64], strides = [1, 1]} : vector<8x192xf32> to vector<8x64xf32>
    %81 = arith.mulf %79, %64 : vector<8x64xf32>
    %82 = arith.mulf %78, %77 : vector<8x64xf32>
    %83 = arith.addf %81, %82 : vector<8x64xf32>
    %84 = math.tanh %83 : vector<8x64xf32>
    %85 = arith.mulf %80, %84 : vector<8x64xf32>
    %86 = vector.extract_strided_slice %6 {offsets = [32, 0], sizes = [8, 256], strides = [1, 1]} : vector<64x256xf32> to vector<8x256xf32>
    %cst_16 = arith.constant dense<0.000000e+00> : vector<8x256xf32>
    %87 = tpu.matmul %85, %7, %cst_16 {dimension_numbers = #tpu.dot_dimension_numbers<[1], [0], [0], [1], [0, 0, 1, 1], [], []>} : vector<8x64xf32>, vector<64x256xf32>, vector<8x256xf32> -> vector<8x256xf32>
    %88 = arith.addf %86, %87 : vector<8x256xf32>
    %89 = vector.extract_strided_slice %88 {offsets = [0, 0], sizes = [8, 192], strides = [1, 1]} : vector<8x256xf32> to vector<8x192xf32>
    %90 = arith.negf %89 : vector<8x192xf32>
    %91 = math.exp %90 : vector<8x192xf32>
    %cst_17 = arith.constant 1.000000e+00 : f32
    %92 = vector.broadcast %cst_17 : f32 to vector<8x192xf32>
    %93 = arith.addf %92, %91 : vector<8x192xf32>
    %94 = arith.divf %92, %93 : vector<8x192xf32>
    %95 = vector.extract_strided_slice %88 {offsets = [0, 192], sizes = [8, 64], strides = [1, 1]} : vector<8x256xf32> to vector<8x64xf32>
    %96 = math.tanh %95 : vector<8x64xf32>
    %97 = vector.extract_strided_slice %94 {offsets = [0, 0], sizes = [8, 64], strides = [1, 1]} : vector<8x192xf32> to vector<8x64xf32>
    %98 = vector.extract_strided_slice %94 {offsets = [0, 64], sizes = [8, 64], strides = [1, 1]} : vector<8x192xf32> to vector<8x64xf32>
    %99 = vector.extract_strided_slice %94 {offsets = [0, 128], sizes = [8, 64], strides = [1, 1]} : vector<8x192xf32> to vector<8x64xf32>
    %100 = arith.mulf %98, %83 : vector<8x64xf32>
    %101 = arith.mulf %97, %96 : vector<8x64xf32>
    %102 = arith.addf %100, %101 : vector<8x64xf32>
    %103 = math.tanh %102 : vector<8x64xf32>
    %104 = arith.mulf %99, %103 : vector<8x64xf32>
    %105 = vector.extract_strided_slice %6 {offsets = [40, 0], sizes = [8, 256], strides = [1, 1]} : vector<64x256xf32> to vector<8x256xf32>
    %cst_18 = arith.constant dense<0.000000e+00> : vector<8x256xf32>
    %106 = tpu.matmul %104, %7, %cst_18 {dimension_numbers = #tpu.dot_dimension_numbers<[1], [0], [0], [1], [0, 0, 1, 1], [], []>} : vector<8x64xf32>, vector<64x256xf32>, vector<8x256xf32> -> vector<8x256xf32>
    %107 = arith.addf %105, %106 : vector<8x256xf32>
    %108 = vector.extract_strided_slice %107 {offsets = [0, 0], sizes = [8, 192], strides = [1, 1]} : vector<8x256xf32> to vector<8x192xf32>
    %109 = arith.negf %108 : vector<8x192xf32>
    %110 = math.exp %109 : vector<8x192xf32>
    %cst_19 = arith.constant 1.000000e+00 : f32
    %111 = vector.broadcast %cst_19 : f32 to vector<8x192xf32>
    %112 = arith.addf %111, %110 : vector<8x192xf32>
    %113 = arith.divf %111, %112 : vector<8x192xf32>
    %114 = vector.extract_strided_slice %107 {offsets = [0, 192], sizes = [8, 64], strides = [1, 1]} : vector<8x256xf32> to vector<8x64xf32>
    %115 = math.tanh %114 : vector<8x64xf32>
    %116 = vector.extract_strided_slice %113 {offsets = [0, 0], sizes = [8, 64], strides = [1, 1]} : vector<8x192xf32> to vector<8x64xf32>
    %117 = vector.extract_strided_slice %113 {offsets = [0, 64], sizes = [8, 64], strides = [1, 1]} : vector<8x192xf32> to vector<8x64xf32>
    %118 = vector.extract_strided_slice %113 {offsets = [0, 128], sizes = [8, 64], strides = [1, 1]} : vector<8x192xf32> to vector<8x64xf32>
    %119 = arith.mulf %117, %102 : vector<8x64xf32>
    %120 = arith.mulf %116, %115 : vector<8x64xf32>
    %121 = arith.addf %119, %120 : vector<8x64xf32>
    %122 = math.tanh %121 : vector<8x64xf32>
    %123 = arith.mulf %118, %122 : vector<8x64xf32>
    %124 = vector.extract_strided_slice %6 {offsets = [48, 0], sizes = [8, 256], strides = [1, 1]} : vector<64x256xf32> to vector<8x256xf32>
    %cst_20 = arith.constant dense<0.000000e+00> : vector<8x256xf32>
    %125 = tpu.matmul %123, %7, %cst_20 {dimension_numbers = #tpu.dot_dimension_numbers<[1], [0], [0], [1], [0, 0, 1, 1], [], []>} : vector<8x64xf32>, vector<64x256xf32>, vector<8x256xf32> -> vector<8x256xf32>
    %126 = arith.addf %124, %125 : vector<8x256xf32>
    %127 = vector.extract_strided_slice %126 {offsets = [0, 0], sizes = [8, 192], strides = [1, 1]} : vector<8x256xf32> to vector<8x192xf32>
    %128 = arith.negf %127 : vector<8x192xf32>
    %129 = math.exp %128 : vector<8x192xf32>
    %cst_21 = arith.constant 1.000000e+00 : f32
    %130 = vector.broadcast %cst_21 : f32 to vector<8x192xf32>
    %131 = arith.addf %130, %129 : vector<8x192xf32>
    %132 = arith.divf %130, %131 : vector<8x192xf32>
    %133 = vector.extract_strided_slice %126 {offsets = [0, 192], sizes = [8, 64], strides = [1, 1]} : vector<8x256xf32> to vector<8x64xf32>
    %134 = math.tanh %133 : vector<8x64xf32>
    %135 = vector.extract_strided_slice %132 {offsets = [0, 0], sizes = [8, 64], strides = [1, 1]} : vector<8x192xf32> to vector<8x64xf32>
    %136 = vector.extract_strided_slice %132 {offsets = [0, 64], sizes = [8, 64], strides = [1, 1]} : vector<8x192xf32> to vector<8x64xf32>
    %137 = vector.extract_strided_slice %132 {offsets = [0, 128], sizes = [8, 64], strides = [1, 1]} : vector<8x192xf32> to vector<8x64xf32>
    %138 = arith.mulf %136, %121 : vector<8x64xf32>
    %139 = arith.mulf %135, %134 : vector<8x64xf32>
    %140 = arith.addf %138, %139 : vector<8x64xf32>
    %141 = math.tanh %140 : vector<8x64xf32>
    %142 = arith.mulf %137, %141 : vector<8x64xf32>
    %143 = vector.extract_strided_slice %6 {offsets = [56, 0], sizes = [8, 256], strides = [1, 1]} : vector<64x256xf32> to vector<8x256xf32>
    %cst_22 = arith.constant dense<0.000000e+00> : vector<8x256xf32>
    %144 = tpu.matmul %142, %7, %cst_22 {dimension_numbers = #tpu.dot_dimension_numbers<[1], [0], [0], [1], [0, 0, 1, 1], [], []>} : vector<8x64xf32>, vector<64x256xf32>, vector<8x256xf32> -> vector<8x256xf32>
    %145 = arith.addf %143, %144 : vector<8x256xf32>
    %146 = vector.extract_strided_slice %145 {offsets = [0, 0], sizes = [8, 192], strides = [1, 1]} : vector<8x256xf32> to vector<8x192xf32>
    %147 = arith.negf %146 : vector<8x192xf32>
    %148 = math.exp %147 : vector<8x192xf32>
    %cst_23 = arith.constant 1.000000e+00 : f32
    %149 = vector.broadcast %cst_23 : f32 to vector<8x192xf32>
    %150 = arith.addf %149, %148 : vector<8x192xf32>
    %151 = arith.divf %149, %150 : vector<8x192xf32>
    %152 = vector.extract_strided_slice %145 {offsets = [0, 192], sizes = [8, 64], strides = [1, 1]} : vector<8x256xf32> to vector<8x64xf32>
    %153 = math.tanh %152 : vector<8x64xf32>
    %154 = vector.extract_strided_slice %151 {offsets = [0, 0], sizes = [8, 64], strides = [1, 1]} : vector<8x192xf32> to vector<8x64xf32>
    %155 = vector.extract_strided_slice %151 {offsets = [0, 64], sizes = [8, 64], strides = [1, 1]} : vector<8x192xf32> to vector<8x64xf32>
    %156 = vector.extract_strided_slice %151 {offsets = [0, 128], sizes = [8, 64], strides = [1, 1]} : vector<8x192xf32> to vector<8x64xf32>
    %157 = arith.mulf %155, %140 : vector<8x64xf32>
    %158 = arith.mulf %154, %153 : vector<8x64xf32>
    %159 = arith.addf %157, %158 : vector<8x64xf32>
    %160 = math.tanh %159 : vector<8x64xf32>
    %161 = arith.mulf %156, %160 : vector<8x64xf32>
    %c0_24 = arith.constant 0 : index
    %c0_25 = arith.constant 0 : index
    %162 = vector.load %arg3[%c0_24, %c0_25] : memref<272x48xf32, #tpu.memory_space<vmem>>, vector<32x48xf32>
    %c32 = arith.constant 32 : index
    %c0_26 = arith.constant 0 : index
    %163 = vector.load %arg3[%c32, %c0_26] : memref<272x48xf32, #tpu.memory_space<vmem>>, vector<64x48xf32>
    %c0_27 = arith.constant 0 : index
    %c0_28 = arith.constant 0 : index
    %164 = vector.load %arg0[%c0_27, %c0_28] : memref<8x32xf32, #tpu.memory_space<vmem>>, vector<8x32xf32>
    %cst_29 = arith.constant dense<0.000000e+00> : vector<8x48xf32>
    %165 = tpu.matmul %164, %162, %cst_29 {dimension_numbers = #tpu.dot_dimension_numbers<[1], [0], [0], [1], [0, 0, 1, 1], [], []>} : vector<8x32xf32>, vector<32x48xf32>, vector<8x48xf32> -> vector<8x48xf32>
    %cst_30 = arith.constant dense<0.000000e+00> : vector<8x48xf32>
    %166 = tpu.matmul %161, %163, %cst_30 {dimension_numbers = #tpu.dot_dimension_numbers<[1], [0], [0], [1], [0, 0, 1, 1], [], []>} : vector<8x64xf32>, vector<64x48xf32>, vector<8x48xf32> -> vector<8x48xf32>
    %167 = arith.addf %165, %166 : vector<8x48xf32>
    %168 = vector.extract_strided_slice %0 {offsets = [1, 0], sizes = [1, 48], strides = [1, 1]} : vector<8x256xf32> to vector<1x48xf32>
    %169 = vector.broadcast %168 : vector<1x48xf32> to vector<8x48xf32>
    %170 = arith.addf %167, %169 : vector<8x48xf32>
    %cst_31 = arith.constant 0.000000e+00 : f32
    %171 = vector.broadcast %cst_31 : f32 to vector<8x48xf32>
    %172 = arith.maximumf %170, %171 : vector<8x48xf32>
    %c96 = arith.constant 96 : index
    %c0_32 = arith.constant 0 : index
    %173 = vector.load %arg3[%c96, %c0_32] : memref<272x48xf32, #tpu.memory_space<vmem>>, vector<48x48xf32>
    %cst_33 = arith.constant dense<0.000000e+00> : vector<8x48xf32>
    %174 = tpu.matmul %172, %173, %cst_33 {dimension_numbers = #tpu.dot_dimension_numbers<[1], [0], [0], [1], [0, 0, 1, 1], [], []>} : vector<8x48xf32>, vector<48x48xf32>, vector<8x48xf32> -> vector<8x48xf32>
    %175 = vector.extract_strided_slice %0 {offsets = [2, 0], sizes = [1, 48], strides = [1, 1]} : vector<8x256xf32> to vector<1x48xf32>
    %176 = vector.broadcast %175 : vector<1x48xf32> to vector<8x48xf32>
    %177 = arith.addf %174, %176 : vector<8x48xf32>
    %cst_34 = arith.constant 0.000000e+00 : f32
    %178 = vector.broadcast %cst_34 : f32 to vector<8x48xf32>
    %179 = arith.maximumf %177, %178 : vector<8x48xf32>
    %c144 = arith.constant 144 : index
    %c0_35 = arith.constant 0 : index
    %180 = vector.load %arg3[%c144, %c0_35] : memref<272x48xf32, #tpu.memory_space<vmem>>, vector<48x16xf32>
    %cst_36 = arith.constant dense<0.000000e+00> : vector<8x16xf32>
    %181 = tpu.matmul %179, %180, %cst_36 {dimension_numbers = #tpu.dot_dimension_numbers<[1], [0], [0], [1], [0, 0, 1, 1], [], []>} : vector<8x48xf32>, vector<48x16xf32>, vector<8x16xf32> -> vector<8x16xf32>
    %182 = vector.extract_strided_slice %0 {offsets = [3, 0], sizes = [1, 16], strides = [1, 1]} : vector<8x256xf32> to vector<1x16xf32>
    %183 = vector.broadcast %182 : vector<1x16xf32> to vector<8x16xf32>
    %184 = arith.addf %181, %183 : vector<8x16xf32>
    %c192 = arith.constant 192 : index
    %c0_37 = arith.constant 0 : index
    %185 = vector.load %arg3[%c192, %c0_37] : memref<272x48xf32, #tpu.memory_space<vmem>>, vector<16x16xf32>
    %cst_38 = arith.constant dense<0.000000e+00> : vector<8x16xf32>
    %186 = tpu.matmul %184, %185, %cst_38 {dimension_numbers = #tpu.dot_dimension_numbers<[1], [0], [0], [1], [0, 0, 1, 1], [], []>} : vector<8x16xf32>, vector<16x16xf32>, vector<8x16xf32> -> vector<8x16xf32>
    %187 = vector.extract_strided_slice %0 {offsets = [4, 0], sizes = [1, 16], strides = [1, 1]} : vector<8x256xf32> to vector<1x16xf32>
    %188 = vector.broadcast %187 : vector<1x16xf32> to vector<8x16xf32>
    %189 = arith.addf %186, %188 : vector<8x16xf32>
    %c208 = arith.constant 208 : index
    %c0_39 = arith.constant 0 : index
    %190 = vector.load %arg3[%c208, %c0_39] : memref<272x48xf32, #tpu.memory_space<vmem>>, vector<48x4xf32>
    %cst_40 = arith.constant dense<0.000000e+00> : vector<8x4xf32>
    %191 = tpu.matmul %179, %190, %cst_40 {dimension_numbers = #tpu.dot_dimension_numbers<[1], [0], [0], [1], [0, 0, 1, 1], [], []>} : vector<8x48xf32>, vector<48x4xf32>, vector<8x4xf32> -> vector<8x4xf32>
    %c256 = arith.constant 256 : index
    %c0_41 = arith.constant 0 : index
    %192 = vector.load %arg3[%c256, %c0_41] : memref<272x48xf32, #tpu.memory_space<vmem>>, vector<16x4xf32>
    %cst_42 = arith.constant dense<0.000000e+00> : vector<8x4xf32>
    %193 = tpu.matmul %189, %192, %cst_42 {dimension_numbers = #tpu.dot_dimension_numbers<[1], [0], [0], [1], [0, 0, 1, 1], [], []>} : vector<8x16xf32>, vector<16x4xf32>, vector<8x4xf32> -> vector<8x4xf32>
    %194 = arith.addf %191, %193 : vector<8x4xf32>
    %195 = vector.extract_strided_slice %0 {offsets = [5, 0], sizes = [1, 4], strides = [1, 1]} : vector<8x256xf32> to vector<1x4xf32>
    %196 = vector.broadcast %195 : vector<1x4xf32> to vector<8x4xf32>
    %197 = arith.addf %194, %196 : vector<8x4xf32>
    %198 = arith.negf %197 : vector<8x4xf32>
    %199 = math.exp %198 : vector<8x4xf32>
    %cst_43 = arith.constant 1.000000e+00 : f32
    %200 = vector.broadcast %cst_43 : f32 to vector<8x4xf32>
    %201 = arith.addf %200, %199 : vector<8x4xf32>
    %202 = arith.divf %200, %201 : vector<8x4xf32>
    %c0_44 = arith.constant 0 : index
    %203 = memref.load %arg5[%c0_44] : memref<2xf32, #tpu.memory_space<smem>>
    %204 = vector.broadcast %203 : f32 to vector<8x4xf32>
    %205 = arith.mulf %202, %204 : vector<8x4xf32>
    %c1 = arith.constant 1 : index
    %206 = memref.load %arg5[%c1] : memref<2xf32, #tpu.memory_space<smem>>
    %207 = vector.broadcast %206 : f32 to vector<8x4xf32>
    %208 = arith.addf %205, %207 : vector<8x4xf32>
    %209 = tpu.iota {dimensions = array<i32: 1>} : vector<8x4xi32>
    %c3_i32 = arith.constant 3 : i32
    %210 = vector.broadcast %c3_i32 : i32 to vector<8x4xi32>
    %211 = arith.cmpi eq, %209, %210 : vector<8x4xi32>
    %212 = arith.select %211, %208, %197 : vector<8x4xi1>, vector<8x4xf32>
    %cst_45 = arith.constant 0.000000e+00 : f32
    %213 = vector.broadcast %cst_45 : f32 to vector<8x60xf32>
    %214 = tpu.concatenate %179, %189, %212, %213 in 1 : vector<8x48xf32>, vector<8x16xf32>, vector<8x4xf32>, vector<8x60xf32> -> vector<8x128xf32>
    %c0_46 = arith.constant 0 : index
    %c0_47 = arith.constant 0 : index
    %215 = vector.load %arg6[%c0_46, %c0_47] : memref<8x128xf32, #tpu.memory_space<vmem>>, vector<8x128xf32>
    tpu.vector_store %arg6[%c0_46, %c0_47], %214 {strides = array<i32>} : memref<8x128xf32, #tpu.memory_space<vmem>>, vector<8x128xf32>,
    return
  }
}

</mosaic_0001>

<bundles_post_ra>
// kernel: v2_forward.1
= control target key start
LH: loop header
LB: loop body
LE: loop exit
PB: predicated region body
PF: predicated region fallthrough
CT: control target
= control target key end

     0   :  { %11 = vsyncpa [#allocation3], 0  ;;  %s2594_s0 = inlined_call_operand.vmem [shape: f32[8,32], index: 0, kind: input, shape index: {}]   ;;  %s2595_s1 = inlined_call_operand.vmem [shape: f32[64,64], index: 1, kind: input, shape index: {}]   ;;  %s2596_s2 = inlined_call_operand.vmem [shape: f32[128,256], index: 2, kind: input, shape index: {}]   ;;  %s2597_s3 = inlined_call_operand.vmem [shape: f32[272,48], index: 3, kind: input, shape index: {}]   ;;  %s2598_s4 = inlined_call_operand.vmem [shape: f32[8,256], index: 4, kind: input, shape index: {}]   ;;  %s2599_s5 = inlined_call_operand.vmem [shape: f32[2], index: 5, kind: input, shape index: {}]   ;;  %s2600_s6 = inlined_call_operand.vmem [shape: f32[8,128], index: 6, kind: output, shape index: {}]  }
   0x1   :  { %s28_s23 = sshll.u32 %s2599_s5, 4  ;;  %s29_s23 = int_to_ptr.vmem [resolvable:$true] %s28_s23 }
   0x2   :  { %s1951_s24 = scalar_lea.vmem %s29_s23, 16  ;;  %p1956_p1 = scmp.lt.s32.totalorder %s29_s23, %s29_s23 }
   0x3   :  { %p1952_p0 = scmp.ne.s32.totalorder %s29_s23, %s1951_s24  ;;  %p1957_p2 = scmp.lt.s32.totalorder %s1951_s24, %s1951_s24 }
   0x5   :  { %p1958_p3 = por %p1957_p2, %p1956_p1 }
   0x7   :  { %p1959_p4 = pnand %p1958_p3, %p1952_p0 }
   0x9   :  { %1962 = shalt.err (!%p1959_p4)
}
   0xa   :  { %s1965_s25 = smov [#allocation2]  }
   0xb   :  { %31 = dma.vmem_to_smem %s29_s23, 16, %s1965_s25, [#allocation3]  }
   0xc   :  { %1963 = dma.done.wait [#allocation3], 16  }
   0xd   :  { %1964 = vsyncadd [#allocation3], 4294967280 }
   0xe   :  { %35 = sfence }
   0xf   :  { %v61_v0 = vld [vmem:[%s2596_s2 + $0x78] sm:$0xff]  ;;  %v60_v2 = vld [vmem:[%s2596_s2 + $0x70] sm:$0xff]  ;;  %v59_v4 = vld [vmem:[%s2596_s2 + $0x68] sm:$0xff]  ;;  %vm70_vm0 = vcmask 523264   ;;  %v1966_v33 = vmov 0.0   ;;  %v62_v34 = vlaneseq  ;;  %s1967_s20 = smov 64  }
  0x10   :  { %v2014_v1 = vld [vmem:[%s2596_s2 + $0xf8] sm:$0xff]  ;;  %111 = vmatprep.subr.mxu0 %v61_v0  ;;  %v2023_v3 = vld [vmem:[%s2596_s2 + $0xf0] sm:$0xff]  ;;  %v2031_v5 = vld [vmem:[%s2596_s2 + $0xe8] sm:$0xff]  ;;  %159 = vmatprep.mubr.f32.mxu0 %v1966_v33  ;;  %vm1968_vm1 = vmmov 0   ;;  %vm1158_vm2 = vcmask 261120   ;;  %vm1248_vm3 = vcmask 392192  }
  0x11   :  { %243 = vmatprep.subr.mxu1 %v2014_v1  ;;  %112 = vmatpush1.msra.mxu0 %v60_v2  ;;  %v58_v6 = vld [vmem:[%s2596_s2 + $0x60] sm:$0xff]  ;;  %v57_v8 = vld [vmem:[%s2596_s2 + $0x58] sm:$0xff]  ;;  %v56_v10 = vld [vmem:[%s2596_s2 + $0x50] sm:$0xff]  ;;  %v2196_v35 = vshrl.u32 %v62_v34, 7  ;;  %vm1412_vm4 = vcmask 130048   ;;  %s1969_s26 = smov 48  }
  0x12   :  { %244 = vmatpush1.msra.mxu1 %v2023_v3  ;;  %v2040_v7 = vld [vmem:[%s2596_s2 + $0xe0] sm:$0xff]  ;;  %113 = vmatprep.subr.mxu0 %v59_v4  ;;  %v2049_v9 = vld [vmem:[%s2596_s2 + $0xd8] sm:$0xff]  ;;  %v2057_v11 = vld [vmem:[%s2596_s2 + $0xd0] sm:$0xff]  ;;  %s1714_s27 = sld [smem:[#allocation2 + $0x1]]  ;;  %vm1667_vm6 = vcmask 556032  }
  0x13   :  { %245 = vmatprep.subr.mxu1 %v2031_v5  ;;  %114 = vmatpush1.msra.mxu0 %v58_v6  ;;  %v55_v12 = vld [vmem:[%s2596_s2 + $0x48] sm:$0xff]  ;;  %v54_v14 = vld [vmem:[%s2596_s2 + $0x40] sm:$0xff]  ;;  %v53_v16 = vld [vmem:[%s2596_s2 + $0x38] sm:$0xff]  ;;  %v64_v36 = vsub.s32 0, %v2196_v35 }
  0x14   :  { %246 = vmatpush1.msra.mxu1 %v2040_v7  ;;  %v2066_v13 = vld [vmem:[%s2596_s2 + $0xc8] sm:$0xff]  ;;  %115 = vmatprep.subr.mxu0 %v57_v8  ;;  %v2075_v15 = vld [vmem:[%s2596_s2 + $0xc0] sm:$0xff]  ;;  %v2084_v17 = vld [vmem:[%s2596_s2 + $0xb8] sm:$0xff] }
  0x15   :  { %247 = vmatprep.subr.mxu1 %v2049_v9  ;;  %116 = vmatpush1.msra.mxu0 %v56_v10  ;;  %v52_v18 = vld [vmem:[%s2596_s2 + $0x30] sm:$0xff]  ;;  %v51_v20 = vld [vmem:[%s2596_s2 + $0x28] sm:$0xff]  ;;  %v50_v22 = vld [vmem:[%s2596_s2 + $0x20] sm:$0xff] }
  0x16   :  { %248 = vmatpush1.msra.mxu1 %v2057_v11  ;;  %117 = vmatprep.subr.mxu0 %v55_v12  ;;  %v2093_v19 = vld [vmem:[%s2596_s2 + $0xb0] sm:$0xff]  ;;  %v2102_v21 = vld [vmem:[%s2596_s2 + $0xa8] sm:$0xff]  ;;  %v2111_v23 = vld [vmem:[%s2596_s2 + $0xa0] sm:$0xff] }
  0x17   :  { %249 = vmatprep.subr.mxu1 %v2066_v13  ;;  %118 = vmatpush1.msra.mxu0 %v54_v14  ;;  %v49_v24 = vld [vmem:[%s2596_s2 + $0x18] sm:$0xff]  ;;  %v48_v26 = vld [vmem:[%s2596_s2 + $0x10] sm:$0xff]  ;;  %v47_v28 = vld [vmem:[%s2596_s2 + $0x8] sm:$0xff] }
  0x18   :  { %250 = vmatpush1.msra.mxu1 %v2075_v15  ;;  %119 = vmatprep.subr.mxu0 %v53_v16  ;;  %v2120_v25 = vld [vmem:[%s2596_s2 + $0x98] sm:$0xff]  ;;  %v2129_v27 = vld [vmem:[%s2596_s2 + $0x90] sm:$0xff]  ;;  %v2138_v29 = vld [vmem:[%s2596_s2 + $0x88] sm:$0xff] }
  0x19   :  { %251 = vmatprep.subr.mxu1 %v2084_v17  ;;  %120 = vmatpush1.msra.mxu0 %v52_v18  ;;  %v46_v30 = vld [vmem:[%s2596_s2] sm:$0xff]  ;;  %v37_v38 = vld [vmem:[%s2598_s4 + $0x8] sm:$0xff] }
  0x1a   :  { %252 = vmatpush1.msra.mxu1 %v2093_v19  ;;  %121 = vmatprep.subr.mxu0 %v51_v20  ;;  %v2148_v31 = vld [vmem:[%s2596_s2 + $0x80] sm:$0xff]  ;;  %v2210_v40 = vrot.slane %v37_v38, %v64_v36  ;;  %v39_v56 = vld [vmem:[%s2595_s1 + $0x8] sm:$0xff]  ;;  %v40_v38 = vld [vmem:[%s2595_s1 + $0x10] sm:$0xff] }
  0x1b   :  { %253 = vmatprep.subr.mxu1 %v2102_v21  ;;  %122 = vmatpush1.msra.mxu0 %v50_v22  ;;  %v38_v32 = vld [vmem:[%s2595_s1] sm:$0xff] }
  0x1c   :  { %254 = vmatpush1.msra.mxu1 %v2111_v23  ;;  %123 = vmatprep.subr.mxu0 %v49_v24  ;;  %v2202_v37 = vld [vmem:[%s2598_s4] sm:$0xff] }
  0x1d   :  { %255 = vmatprep.subr.mxu1 %v2120_v25  ;;  %124 = vmatpush1.msra.mxu0 %v48_v26  ;;  %v2208_v39 = vrot.slane %v2202_v37, %v64_v36 }
  0x1e   :  { %256 = vmatpush1.msra.mxu1 %v2129_v27  ;;  %125 = vmatprep.subr.mxu0 %v47_v28 }
  0x1f   :  { %257 = vmatprep.subr.mxu1 %v2138_v29  ;;  %126 = vmatpush1.msra.mxu0 %v46_v30 }
  0x20   :  { %258 = vmatpush1.msra.mxu1 %v2148_v31  ;;  %291 = vmatprep.mubr.f32.mxu1 %v1966_v33 }
  0x21   :  { %1675 = vmatmul.mubr.msk.f32.vlgmr.msra.gmra.mxu0 %vm70_vm0, %v38_v32  ;;  %292 = vmatmul.mubr.f32.vlgmr.msra.gmra.mxu1 %v1966_v33 }
  0x22   :  { %349 = vmatprep.subr.mxu1 %v2014_v1  ;;  %165 = vmatprep.mubr.f32.mxu0 %v1966_v33 }
  0x23   :  { %350 = vmatpush1.msra.mxu1 %v2023_v3  ;;  %397 = vmatprep.mubr.f32.mxu1 %v1966_v33 }
  0x24   :  { %351 = vmatprep.subr.mxu1 %v2031_v5  ;;  %455 = vmatprep.subr.mxu0 %v2014_v1 }
  0x25   :  { %352 = vmatpush1.msra.mxu1 %v2040_v7  ;;  %456 = vmatpush1.msra.mxu0 %v2023_v3 }
  0x26   :  { %353 = vmatprep.subr.mxu1 %v2049_v9  ;;  %457 = vmatprep.subr.mxu0 %v2031_v5 }
  0x27   :  { %354 = vmatpush1.msra.mxu1 %v2057_v11  ;;  %458 = vmatpush1.msra.mxu0 %v2040_v7 }
  0x28   :  { %355 = vmatprep.subr.mxu1 %v2066_v13  ;;  %459 = vmatprep.subr.mxu0 %v2049_v9 }
  0x29   :  { %356 = vmatpush1.msra.mxu1 %v2075_v15  ;;  %460 = vmatpush1.msra.mxu0 %v2057_v11 }
  0x2a   :  { %357 = vmatprep.subr.mxu1 %v2084_v17  ;;  %461 = vmatprep.subr.mxu0 %v2066_v13 }
  0x2b   :  { %358 = vmatpush1.msra.mxu1 %v2093_v19  ;;  %462 = vmatpush1.msra.mxu0 %v2075_v15 }
  0x2c   :  { %359 = vmatprep.subr.mxu1 %v2102_v21  ;;  %463 = vmatprep.subr.mxu0 %v2084_v17 }
  0x2d   :  { %360 = vmatpush1.msra.mxu1 %v2111_v23  ;;  %464 = vmatpush1.msra.mxu0 %v2093_v19 }
  0x2e   :  { %361 = vmatprep.subr.mxu1 %v2120_v25  ;;  %465 = vmatprep.subr.mxu0 %v2102_v21 }
  0x2f   :  { %362 = vmatpush1.msra.mxu1 %v2129_v27  ;;  %466 = vmatpush1.msra.mxu0 %v2111_v23 }
  0x30   :  { %363 = vmatprep.subr.mxu1 %v2138_v29  ;;  %467 = vmatprep.subr.mxu0 %v2120_v25 }
  0x31   :  { %364 = vmatpush1.msra.mxu1 %v2148_v31  ;;  %468 = vmatpush1.msra.mxu0 %v2129_v27 }
  0x32   :  { %469 = vmatprep.subr.mxu0 %v2138_v29  ;;  %561 = vmatprep.subr.mxu1 %v2014_v1 }
  0x33   :  { %470 = vmatpush1.msra.mxu0 %v2148_v31 }
  0x34   :  { %667 = vmatprep.subr.mxu0 %v2014_v1  ;;  %1676 = vmatmul.mubr.msk.f32.gmra.mxu0 %vm70_vm0, %v39_v56 }
  0x35   :  { %171 = vmatprep.mubr.f32.mxu0 %v1966_v33 }
  0x38   :  { %1677 = vmatmul.mubr.msk.f32.gmra.mxu0 %vm70_vm0, %v40_v38 }
  0x39   :  { %177 = vmatprep.mubr.f32.mxu0 %v1966_v33 }
  0xe1   :  { %v161_v41 = vpop.f32.mrf.mxu0  ;;  %v293_v42 = vpop.f32.mrf.mxu1 }
  0xe2   :  { %v162_v43 = vadd.f32 %v161_v41, %v2208_v39  ;;  %v41_v41 = vld [vmem:[%s2595_s1 + $0x18] sm:$0xff] }
  0xe3   :  { %v163_v44 = vpop.f32.mrf.mxu0  ;;  %v295_v47 = vpop.f32.mrf.mxu1  ;;  %1678 = vmatmul.mubr.msk.f32.gmra.mxu0 %vm70_vm0, %v41_v41 }
  0xe4   :  { %v298_v45 = vadd.f32 %v293_v42, %v162_v43  ;;  %v164_v46 = vadd.f32 %v163_v44, %v2210_v40  ;;  %183 = vmatprep.mubr.f32.mxu0 %v1966_v33  ;;  %v42_v42 = vld [vmem:[%s2595_s1 + $0x20] sm:$0xff]  ;;  %v43_v43 = vld [vmem:[%s2595_s1 + $0x28] sm:$0xff]  ;;  %v44_v44 = vld [vmem:[%s2595_s1 + $0x30] sm:$0xff] }
  0xe6   :  { %v299_v48 = vadd.f32 %v295_v47, %v164_v46  ;;  %v1683_v50 = vmul.f32 -1.442695, %v298_v45  ;;  %v45_v45 = vld [vmem:[%s2595_s1 + $0x38] sm:$0xff] }
  0xe7   :  { %1679 = vmatmul.mubr.msk.f32.gmra.mxu0 %vm70_vm0, %v42_v42 }
  0xe8   :  { %1850 = vtanh.f32 %v299_v48  ;;  %v1684_v61 = vmul.f32 -1.442695, %v299_v48  ;;  %189 = vmatprep.mubr.f32.mxu0 %v1966_v33 }
  0xe9   :  { %1852 = vpow2.f32 %v1683_v50 }
  0xeb   :  { %1680 = vmatmul.mubr.msk.f32.gmra.mxu0 %vm70_vm0, %v43_v43 }
  0xec   :  { %195 = vmatprep.mubr.f32.mxu0 %v1966_v33 }
  0xef   :  { %1681 = vmatmul.mubr.msk.f32.gmra.mxu0 %vm70_vm0, %v44_v44 }
  0xf0   :  { %201 = vmatprep.mubr.f32.mxu0 %v1966_v33 }
  0xf3   :  { %1682 = vmatmul.mubr.msk.f32.gmra.mxu0 %vm70_vm0, %v45_v45 }
  0xf4   :  { %v167_v6 = vpop.f32.mrf.mxu0  ;;  %503 = vmatprep.mubr.f32.mxu0 %v1966_v33 }
  0xf5   :  { %v1851_v49 = vpop.eup %1850  ;;  %v168_v8 = vadd.f32 %v167_v6, %v2208_v39 }
  0xf6   :  { %315 = vrot.lane.b32.xlu0 %v1851_v49, %s1967_s20  ;;  %v1853_v51 = vpop.eup %1852  ;;  %v169_v10 = vpop.f32.mrf.mxu0 }
  0xf7   :  { %v306_v52 = vadd.f32 1.0, %v1853_v51  ;;  %v170_v14 = vadd.f32 %v169_v10, %v2210_v40 }
  0xf8   :  { %v173_v56 = vpop.f32.mrf.mxu0 }
  0xf9   :  { %1854 = vrcp.f32 %v306_v52 }
 0x106   :  { %v1855_v53 = vpop.eup %1854 }
 0x107   :  { %v313_v57 = vmul.f32 0.0, %v1855_v53 }
 0x168   :  { %v316_v54 = vpop.permute.xlu0 %315 }
 0x169   :  { %v318_v55 = vmul.f32 %v1855_v53, %v316_v54 }
 0x16b   :  { %320 = vrot.lane.b32.xlu0 %v318_v55, %s1967_s20 }
 0x1dd   :  { %v321_v58 = vpop.permute.xlu0 %320 }
 0x1de   :  { %v2221_v59 = vadd.f32 %v321_v58, %v313_v57  ;;  %v175_v57 = vpop.f32.mrf.mxu0 }
 0x1e0   :  { %1856 = vtanh.f32 %v2221_v59  ;;  %v179_v58 = vpop.f32.mrf.mxu0 }
 0x1e1   :  { %1858 = vpow2.f32 %v1684_v61 }
 0x1ed   :  { %v1857_v60 = vpop.eup %1856 }
 0x1ee   :  { %326 = vrot.lane.b32.xlu1 %v1857_v60, %s1967_s20  ;;  %v1859_v62 = vpop.eup %1858 }
 0x1ef   :  { %v307_v63 = vadd.f32 1.0, %v1859_v62 }
 0x1f1   :  { %1860 = vrcp.f32 %v307_v63 }
 0x1fe   :  { %v1861_v0 = vpop.eup %1860 }
 0x260   :  { %v327_v2 = vpop.permute.xlu1 %326 }
 0x261   :  { %v329_v4 = vmul.f32 %v1861_v0, %v327_v2 }
 0x263   :  { %1685 = vmatmul.mubr.msk.f32.vlgmr.msra.gmra.mxu1 %vm70_vm0, %v329_v4 }
 0x264   :  { %562 = vmatpush1.msra.mxu1 %v2023_v3  ;;  %609 = vmatprep.mubr.f32.mxu1 %v1966_v33 }
 0x265   :  { %563 = vmatprep.subr.mxu1 %v2031_v5 }
 0x266   :  { %564 = vmatpush1.msra.mxu1 %v2040_v7 }
 0x267   :  { %565 = vmatprep.subr.mxu1 %v2049_v9 }
 0x268   :  { %566 = vmatpush1.msra.mxu1 %v2057_v11 }
 0x269   :  { %567 = vmatprep.subr.mxu1 %v2066_v13 }
 0x26a   :  { %568 = vmatpush1.msra.mxu1 %v2075_v15 }
 0x26b   :  { %569 = vmatprep.subr.mxu1 %v2084_v17 }
 0x26c   :  { %570 = vmatpush1.msra.mxu1 %v2093_v19 }
 0x26d   :  { %571 = vmatprep.subr.mxu1 %v2102_v21 }
 0x26e   :  { %572 = vmatpush1.msra.mxu1 %v2111_v23 }
 0x26f   :  { %573 = vmatprep.subr.mxu1 %v2120_v25 }
 0x270   :  { %574 = vmatpush1.msra.mxu1 %v2129_v27 }
 0x271   :  { %575 = vmatprep.subr.mxu1 %v2138_v29 }
 0x272   :  { %576 = vmatpush1.msra.mxu1 %v2148_v31 }
 0x273   :  { %773 = vmatprep.subr.mxu1 %v2014_v1 }
 0x323   :  { %v399_v12 = vpop.f32.mrf.mxu1 }
 0x324   :  { %v404_v16 = vadd.f32 %v399_v12, %v168_v8  ;;  %v174_v8 = vadd.f32 %v173_v56, %v2208_v39  ;;  %v176_v12 = vadd.f32 %v175_v57, %v2210_v40 }
 0x325   :  { %v401_v18 = vpop.f32.mrf.mxu1 }
 0x326   :  { %v405_v20 = vadd.f32 %v401_v18, %v170_v14  ;;  %v1686_v24 = vmul.f32 -1.442695, %v404_v16 }
 0x328   :  { %1862 = vtanh.f32 %v405_v20  ;;  %v1687_v50 = vmul.f32 -1.442695, %v405_v20 }
 0x329   :  { %1864 = vpow2.f32 %v1686_v24 }
 0x335   :  { %v1863_v22 = vpop.eup %1862 }
 0x336   :  { %421 = vrot.lane.b32.xlu1 %v1863_v22, %s1967_s20  ;;  %v1865_v26 = vpop.eup %1864 }
 0x337   :  { %v412_v28 = vadd.f32 1.0, %v1865_v26 }
 0x339   :  { %1866 = vrcp.f32 %v412_v28 }
 0x346   :  { %v1867_v30 = vpop.eup %1866 }
 0x347   :  { %v419_v46 = vmul.f32 %v1867_v30, %v2221_v59  ;;  %v181_v59 = vpop.f32.mrf.mxu0 }
 0x349   :  { %v2297_v60 = vpop.f32.mrf.mxu0 }
 0x34b   :  { %v2299_v61 = vpop.f32.mrf.mxu0 }
 0x34d   :  { %v2301_v62 = vpop.f32.mrf.mxu0 }
 0x34f   :  { %v2303_v63 = vpop.f32.mrf.mxu0 }
 0x351   :  { %v2305_v0 = vpop.f32.mrf.mxu0 }
 0x353   :  { %v2307_v2 = vpop.f32.mrf.mxu0 }
 0x355   :  { %v2309_v4 = vpop.f32.mrf.mxu0 }
 0x357   :  { %v2311_v6 = vpop.f32.mrf.mxu0 }
 0x3a8   :  { %v422_v32 = vpop.permute.xlu1 %421 }
 0x3a9   :  { %v424_v36 = vmul.f32 %v1867_v30, %v422_v32 }
 0x3ab   :  { %426 = vrot.lane.b32.xlu0 %v424_v36, %s1967_s20 }
 0x41d   :  { %v427_v47 = vpop.permute.xlu0 %426 }
 0x41e   :  { %v429_v48 = vadd.f32 %v427_v47, %v419_v46 }
 0x420   :  { %1868 = vtanh.f32 %v429_v48 }
 0x421   :  { %1870 = vpow2.f32 %v1687_v50 }
 0x42d   :  { %v1869_v49 = vpop.eup %1868 }
 0x42e   :  { %432 = vrot.lane.b32.xlu1 %v1869_v49, %s1967_s20  ;;  %v1871_v51 = vpop.eup %1870 }
 0x42f   :  { %v413_v52 = vadd.f32 1.0, %v1871_v51  ;;  %v182_v51 = vadd.f32 %v181_v59, %v2210_v40 }
 0x431   :  { %1872 = vrcp.f32 %v413_v52 }
 0x43e   :  { %v1873_v53 = vpop.eup %1872 }
 0x4a0   :  { %v433_v54 = vpop.permute.xlu1 %432 }
 0x4a1   :  { %v435_v55 = vmul.f32 %v1873_v53, %v433_v54 }
 0x4a3   :  { %1688 = vmatmul.mubr.msk.f32.vlgmr.msra.gmra.mxu0 %vm70_vm0, %v435_v55 }
 0x4a4   :  { %668 = vmatpush1.msra.mxu0 %v2023_v3  ;;  %715 = vmatprep.mubr.f32.mxu0 %v1966_v33 }
 0x4a5   :  { %669 = vmatprep.subr.mxu0 %v2031_v5 }
 0x4a6   :  { %670 = vmatpush1.msra.mxu0 %v2040_v7 }
 0x4a7   :  { %671 = vmatprep.subr.mxu0 %v2049_v9 }
 0x4a8   :  { %672 = vmatpush1.msra.mxu0 %v2057_v11 }
 0x4a9   :  { %673 = vmatprep.subr.mxu0 %v2066_v13 }
 0x4aa   :  { %674 = vmatpush1.msra.mxu0 %v2075_v15 }
 0x4ab   :  { %675 = vmatprep.subr.mxu0 %v2084_v17 }
 0x4ac   :  { %676 = vmatpush1.msra.mxu0 %v2093_v19 }
 0x4ad   :  { %677 = vmatprep.subr.mxu0 %v2102_v21 }
 0x4ae   :  { %678 = vmatpush1.msra.mxu0 %v2111_v23 }
 0x4af   :  { %679 = vmatprep.subr.mxu0 %v2120_v25 }
 0x4b0   :  { %680 = vmatpush1.msra.mxu0 %v2129_v27 }
 0x4b1   :  { %681 = vmatprep.subr.mxu0 %v2138_v29 }
 0x4b2   :  { %682 = vmatpush1.msra.mxu0 %v2148_v31 }
 0x4b3   :  { %879 = vmatprep.subr.mxu0 %v2014_v1 }
 0x563   :  { %v505_v10 = vpop.f32.mrf.mxu0 }
 0x564   :  { %v510_v14 = vadd.f32 %v505_v10, %v174_v8 }
 0x565   :  { %v507_v16 = vpop.f32.mrf.mxu0 }
 0x566   :  { %v511_v18 = vadd.f32 %v507_v16, %v176_v12  ;;  %v1689_v22 = vmul.f32 -1.442695, %v510_v14 }
 0x568   :  { %1874 = vtanh.f32 %v511_v18  ;;  %v1690_v43 = vmul.f32 -1.442695, %v511_v18 }
 0x569   :  { %1876 = vpow2.f32 %v1689_v22 }
 0x575   :  { %v1875_v20 = vpop.eup %1874 }
 0x576   :  { %527 = vrot.lane.b32.xlu0 %v1875_v20, %s1967_s20  ;;  %v1877_v24 = vpop.eup %1876 }
 0x577   :  { %v518_v26 = vadd.f32 1.0, %v1877_v24 }
 0x579   :  { %1878 = vrcp.f32 %v518_v26 }
 0x586   :  { %v1879_v28 = vpop.eup %1878 }
 0x587   :  { %v525_v36 = vmul.f32 %v1879_v28, %v429_v48  ;;  %v180_v48 = vadd.f32 %v179_v58, %v2208_v39 }
 0x5e8   :  { %v528_v30 = vpop.permute.xlu0 %527 }
 0x5e9   :  { %v530_v32 = vmul.f32 %v1879_v28, %v528_v30  ;;  %v186_v30 = vadd.f32 %v2297_v60, %v2208_v39 }
 0x5eb   :  { %532 = vrot.lane.b32.xlu1 %v530_v32, %s1967_s20 }
 0x65d   :  { %v533_v38 = vpop.permute.xlu1 %532 }
 0x65e   :  { %v535_v41 = vadd.f32 %v533_v38, %v525_v36  ;;  %v188_v36 = vadd.f32 %v2299_v61, %v2210_v40 }
 0x660   :  { %1880 = vtanh.f32 %v535_v41 }
 0x661   :  { %1882 = vpow2.f32 %v1690_v43 }
 0x66d   :  { %v1881_v42 = vpop.eup %1880 }
 0x66e   :  { %538 = vrot.lane.b32.xlu0 %v1881_v42, %s1967_s20  ;;  %v1883_v44 = vpop.eup %1882 }
 0x66f   :  { %v519_v45 = vadd.f32 1.0, %v1883_v44 }
 0x671   :  { %1884 = vrcp.f32 %v519_v45 }
 0x67e   :  { %v1885_v46 = vpop.eup %1884 }
 0x6e0   :  { %v539_v47 = vpop.permute.xlu0 %538 }
 0x6e1   :  { %v541_v49 = vmul.f32 %v1885_v46, %v539_v47 }
 0x6e3   :  { %1691 = vmatmul.mubr.msk.f32.vlgmr.msra.gmra.mxu1 %vm70_vm0, %v541_v49 }
 0x6e4   :  { %774 = vmatpush1.msra.mxu1 %v2023_v3  ;;  %821 = vmatprep.mubr.f32.mxu1 %v1966_v33 }
 0x6e5   :  { %775 = vmatprep.subr.mxu1 %v2031_v5 }
 0x6e6   :  { %776 = vmatpush1.msra.mxu1 %v2040_v7 }
 0x6e7   :  { %777 = vmatprep.subr.mxu1 %v2049_v9 }
 0x6e8   :  { %778 = vmatpush1.msra.mxu1 %v2057_v11 }
 0x6e9   :  { %779 = vmatprep.subr.mxu1 %v2066_v13 }
 0x6ea   :  { %780 = vmatpush1.msra.mxu1 %v2075_v15 }
 0x6eb   :  { %781 = vmatprep.subr.mxu1 %v2084_v17 }
 0x6ec   :  { %782 = vmatpush1.msra.mxu1 %v2093_v19 }
 0x6ed   :  { %783 = vmatprep.subr.mxu1 %v2102_v21 }
 0x6ee   :  { %784 = vmatpush1.msra.mxu1 %v2111_v23 }
 0x6ef   :  { %785 = vmatprep.subr.mxu1 %v2120_v25 }
 0x6f0   :  { %786 = vmatpush1.msra.mxu1 %v2129_v27 }
 0x6f1   :  { %787 = vmatprep.subr.mxu1 %v2138_v29 }
 0x6f2   :  { %788 = vmatpush1.msra.mxu1 %v2148_v31 }
 0x6f3   :  { %985 = vmatprep.subr.mxu1 %v2014_v1 }
 0x7a3   :  { %v611_v50 = vpop.f32.mrf.mxu1 }
 0x7a4   :  { %v616_v52 = vadd.f32 %v611_v50, %v180_v48 }
 0x7a5   :  { %v613_v53 = vpop.f32.mrf.mxu1 }
 0x7a6   :  { %v617_v54 = vadd.f32 %v613_v53, %v182_v51  ;;  %v1692_v56 = vmul.f32 -1.442695, %v616_v52 }
 0x7a8   :  { %1886 = vtanh.f32 %v617_v54  ;;  %v1693_v18 = vmul.f32 -1.442695, %v617_v54 }
 0x7a9   :  { %1888 = vpow2.f32 %v1692_v56 }
 0x7b5   :  { %v1887_v55 = vpop.eup %1886 }
 0x7b6   :  { %633 = vrot.lane.b32.xlu1 %v1887_v55, %s1967_s20  ;;  %v1889_v57 = vpop.eup %1888 }
 0x7b7   :  { %v624_v8 = vadd.f32 1.0, %v1889_v57 }
 0x7b9   :  { %1890 = vrcp.f32 %v624_v8 }
 0x7c6   :  { %v1891_v10 = vpop.eup %1890 }
 0x7c7   :  { %v631_v58 = vmul.f32 %v1891_v10, %v535_v41 }
 0x828   :  { %v634_v12 = vpop.permute.xlu1 %633 }
 0x829   :  { %v636_v1 = vmul.f32 %v1891_v10, %v634_v12 }
 0x82b   :  { %638 = vrot.lane.b32.xlu0 %v636_v1, %s1967_s20 }
 0x89d   :  { %v639_v14 = vpop.permute.xlu0 %638 }
 0x89e   :  { %v641_v59 = vadd.f32 %v639_v14, %v631_v58 }
 0x8a0   :  { %1892 = vtanh.f32 %v641_v59 }
 0x8a1   :  { %1894 = vpow2.f32 %v1693_v18  ;;  %v200_v18 = vadd.f32 %v2307_v2, %v2210_v40 }
 0x8ad   :  { %v1893_v16 = vpop.eup %1892 }
 0x8ae   :  { %644 = vrot.lane.b32.xlu1 %v1893_v16, %s1967_s20  ;;  %v1895_v20 = vpop.eup %1894 }
 0x8af   :  { %v625_v22 = vadd.f32 1.0, %v1895_v20 }
 0x8b1   :  { %1896 = vrcp.f32 %v625_v22 }
 0x8be   :  { %v1897_v24 = vpop.eup %1896 }
 0x920   :  { %v645_v26 = vpop.permute.xlu1 %644 }
 0x921   :  { %v647_v28 = vmul.f32 %v1897_v24, %v645_v26 }
 0x923   :  { %1694 = vmatmul.mubr.msk.f32.vlgmr.msra.gmra.mxu0 %vm70_vm0, %v647_v28 }
 0x924   :  { %880 = vmatpush1.msra.mxu0 %v2023_v3  ;;  %927 = vmatprep.mubr.f32.mxu0 %v1966_v33 }
 0x925   :  { %881 = vmatprep.subr.mxu0 %v2031_v5 }
 0x926   :  { %882 = vmatpush1.msra.mxu0 %v2040_v7 }
 0x927   :  { %883 = vmatprep.subr.mxu0 %v2049_v9 }
 0x928   :  { %884 = vmatpush1.msra.mxu0 %v2057_v11 }
 0x929   :  { %885 = vmatprep.subr.mxu0 %v2066_v13 }
 0x92a   :  { %886 = vmatpush1.msra.mxu0 %v2075_v15 }
 0x92b   :  { %887 = vmatprep.subr.mxu0 %v2084_v17 }
 0x92c   :  { %888 = vmatpush1.msra.mxu0 %v2093_v19 }
 0x92d   :  { %889 = vmatprep.subr.mxu0 %v2102_v21 }
 0x92e   :  { %890 = vmatpush1.msra.mxu0 %v2111_v23 }
 0x92f   :  { %891 = vmatprep.subr.mxu0 %v2120_v25 }
 0x930   :  { %892 = vmatpush1.msra.mxu0 %v2129_v27 }
 0x931   :  { %893 = vmatprep.subr.mxu0 %v2138_v29 }
 0x932   :  { %894 = vmatpush1.msra.mxu0 %v2148_v31 }
 0x933   :  { %1756 = vmatprep.subr.mxu0 %v1966_v33 }
 0x9e3   :  { %v717_v32 = vpop.f32.mrf.mxu0 }
 0x9e4   :  { %v722_v38 = vadd.f32 %v717_v32, %v186_v30 }
 0x9e5   :  { %v719_v41 = vpop.f32.mrf.mxu0 }
 0x9e6   :  { %v723_v42 = vadd.f32 %v719_v41, %v188_v36  ;;  %v1695_v44 = vmul.f32 -1.442695, %v722_v38 }
 0x9e8   :  { %1898 = vtanh.f32 %v723_v42  ;;  %v1696_v52 = vmul.f32 -1.442695, %v723_v42 }
 0x9e9   :  { %1900 = vpow2.f32 %v1695_v44 }
 0x9f5   :  { %v1899_v43 = vpop.eup %1898 }
 0x9f6   :  { %739 = vrot.lane.b32.xlu0 %v1899_v43, %s1967_s20  ;;  %v1901_v45 = vpop.eup %1900 }
 0x9f7   :  { %v730_v46 = vadd.f32 1.0, %v1901_v45 }
 0x9f9   :  { %1902 = vrcp.f32 %v730_v46 }
 0xa06   :  { %v1903_v47 = vpop.eup %1902 }
 0xa07   :  { %v737_v60 = vmul.f32 %v1903_v47, %v641_v59  ;;  %v198_v59 = vadd.f32 %v2305_v0, %v2208_v39 }
 0xa68   :  { %v740_v49 = vpop.permute.xlu0 %739 }
 0xa69   :  { %v742_v48 = vmul.f32 %v1903_v47, %v740_v49 }
 0xa6b   :  { %744 = vrot.lane.b32.xlu1 %v742_v48, %s1967_s20 }
 0xadd   :  { %v745_v50 = vpop.permute.xlu1 %744 }
 0xade   :  { %v747_v61 = vadd.f32 %v745_v50, %v737_v60  ;;  %v204_v60 = vadd.f32 %v2309_v4, %v2208_v39 }
 0xae0   :  { %1904 = vtanh.f32 %v747_v61 }
 0xae1   :  { %1906 = vpow2.f32 %v1696_v52 }
 0xaed   :  { %v1905_v51 = vpop.eup %1904 }
 0xaee   :  { %750 = vrot.lane.b32.xlu0 %v1905_v51, %s1967_s20  ;;  %v1907_v53 = vpop.eup %1906 }
 0xaef   :  { %v731_v54 = vadd.f32 1.0, %v1907_v53 }
 0xaf1   :  { %1908 = vrcp.f32 %v731_v54 }
 0xafe   :  { %v1909_v55 = vpop.eup %1908 }
 0xb60   :  { %v751_v56 = vpop.permute.xlu0 %750 }
 0xb61   :  { %v753_v57 = vmul.f32 %v1909_v55, %v751_v56 }
 0xb63   :  { %1697 = vmatmul.mubr.msk.f32.vlgmr.msra.gmra.mxu1 %vm70_vm0, %v753_v57 }
 0xb64   :  { %986 = vmatpush1.msra.mxu1 %v2023_v3  ;;  %1033 = vmatprep.mubr.f32.mxu1 %v1966_v33  ;;  %v192_v3 = vadd.f32 %v2301_v62, %v2208_v39 }
 0xb65   :  { %987 = vmatprep.subr.mxu1 %v2031_v5 }
 0xb66   :  { %988 = vmatpush1.msra.mxu1 %v2040_v7  ;;  %v194_v7 = vadd.f32 %v2303_v63, %v2210_v40 }
 0xb67   :  { %989 = vmatprep.subr.mxu1 %v2049_v9 }
 0xb68   :  { %990 = vmatpush1.msra.mxu1 %v2057_v11 }
 0xb69   :  { %991 = vmatprep.subr.mxu1 %v2066_v13 }
 0xb6a   :  { %992 = vmatpush1.msra.mxu1 %v2075_v15 }
 0xb6b   :  { %993 = vmatprep.subr.mxu1 %v2084_v17 }
 0xb6c   :  { %994 = vmatpush1.msra.mxu1 %v2093_v19 }
 0xb6d   :  { %995 = vmatprep.subr.mxu1 %v2102_v21 }
 0xb6e   :  { %996 = vmatpush1.msra.mxu1 %v2111_v23 }
 0xb6f   :  { %997 = vmatprep.subr.mxu1 %v2120_v25 }
 0xb70   :  { %998 = vmatpush1.msra.mxu1 %v2129_v27 }
 0xb71   :  { %999 = vmatprep.subr.mxu1 %v2138_v29 }
 0xb72   :  { %1000 = vmatpush1.msra.mxu1 %v2148_v31 }
 0xb73   :  { %1775 = vmatprep.subr.mxu1 %v1966_v33 }
 0xc23   :  { %v823_v5 = vpop.f32.mrf.mxu1 }
 0xc24   :  { %v828_v9 = vadd.f32 %v823_v5, %v192_v3  ;;  %v1075_v5 = vld [vmem:[%s2597_s3 + $0x18] sm:$0xff] }
 0xc25   :  { %v825_v11 = vpop.f32.mrf.mxu1 }
 0xc26   :  { %v829_v13 = vadd.f32 %v825_v11, %v194_v7  ;;  %v1698_v17 = vmul.f32 -1.442695, %v828_v9  ;;  %v1081_v7 = vld [vmem:[%s2597_s3 + $0x48] sm:$0xff]  ;;  %v1074_v9 = vld [vmem:[%s2597_s3 + $0x10] sm:$0xff] }
 0xc27   :  { %v1073_v11 = vld [vmem:[%s2597_s3 + $0x8] sm:$0xff] }
 0xc28   :  { %1910 = vtanh.f32 %v829_v13  ;;  %v1699_v8 = vmul.f32 -1.442695, %v829_v13  ;;  %v1080_v13 = vld [vmem:[%s2597_s3 + $0x40] sm:$0xff] }
 0xc29   :  { %1912 = vpow2.f32 %v1698_v17  ;;  %v1079_v17 = vld [vmem:[%s2597_s3 + $0x38] sm:$0xff] }
 0xc35   :  { %v1911_v15 = vpop.eup %1910 }
 0xc36   :  { %845 = vrot.lane.b32.xlu1 %v1911_v15, %s1967_s20  ;;  %v1913_v19 = vpop.eup %1912  ;;  %v1072_v15 = vld [vmem:[%s2597_s3] sm:$0xff] }
 0xc37   :  { %v836_v21 = vadd.f32 1.0, %v1913_v19  ;;  %v1078_v19 = vld [vmem:[%s2597_s3 + $0x30] sm:$0xff] }
 0xc39   :  { %1914 = vrcp.f32 %v836_v21  ;;  %v1077_v21 = vld [vmem:[%s2597_s3 + $0x28] sm:$0xff] }
 0xc46   :  { %v1915_v23 = vpop.eup %1914 }
 0xc47   :  { %v843_v29 = vmul.f32 %v1915_v23, %v747_v61  ;;  %v206_v61 = vadd.f32 %v2311_v6, %v2210_v40  ;;  %v1083_v40 = vld [vmem:[%s2597_s3 + $0x58] sm:$0xff]  ;;  %v1082_v6 = vld [vmem:[%s2597_s3 + $0x50] sm:$0xff] }
 0xca8   :  { %v846_v25 = vpop.permute.xlu1 %845 }
 0xca9   :  { %v848_v27 = vmul.f32 %v1915_v23, %v846_v25 }
 0xcab   :  { %850 = vrot.lane.b32.xlu0 %v848_v27, %s1967_s20 }
 0xd1d   :  { %v851_v31 = vpop.permute.xlu0 %850 }
 0xd1e   :  { %v853_v62 = vadd.f32 %v851_v31, %v843_v29  ;;  %v1084_v29 = vld [vmem:[%s2594_s0] sm:$0xff] }
 0xd1f   :  { %v1076_v31 = vld [vmem:[%s2597_s3 + $0x20] sm:$0xff] }
 0xd20   :  { %1916 = vtanh.f32 %v853_v62 }
 0xd21   :  { %1918 = vpow2.f32 %v1699_v8  ;;  %v1242_v8 = vld [vmem:[%s2597_s3 + $0x80] sm:$0xff] }
 0xd2d   :  { %v1917_v63 = vpop.eup %1916 }
 0xd2e   :  { %856 = vrot.lane.b32.xlu1 %v1917_v63, %s1967_s20  ;;  %v1919_v10 = vpop.eup %1918 }
 0xd2f   :  { %v837_v12 = vadd.f32 1.0, %v1919_v10 }
 0xd31   :  { %1920 = vrcp.f32 %v837_v12 }
 0xd3e   :  { %v1921_v1 = vpop.eup %1920 }
 0xda0   :  { %v857_v58 = vpop.permute.xlu1 %856 }
 0xda1   :  { %v859_v14 = vmul.f32 %v1921_v1, %v857_v58 }
 0xda3   :  { %1700 = vmatmul.mubr.msk.f32.vlgmr.msra.gmra.mxu0 %vm70_vm0, %v859_v14 }
 0xda4   :  { %1757 = vmatpush3.msra.mxu0 %v1083_v40  ;;  %1772 = vmatprep.mubr.msk.f32.mxu0 %vm1968_vm1, %v1966_v33 }
 0xda5   :  { %1758 = vmatprep.subr.mxu0 %v1966_v33 }
 0xda6   :  { %1759 = vmatpush3.msra.mxu0 %v1082_v6 }
 0xda7   :  { %1760 = vmatprep.subr.mxu0 %v1966_v33 }
 0xda8   :  { %1761 = vmatpush3.msra.mxu0 %v1081_v7 }
 0xda9   :  { %1762 = vmatprep.subr.mxu0 %v1966_v33 }
 0xdaa   :  { %1763 = vmatpush3.msra.mxu0 %v1080_v13  ;;  %v1492_v13 = vld [vmem:[%s2597_s3 + $0x100] sm:$0xff] }
 0xdab   :  { %1764 = vmatprep.subr.mxu0 %v1966_v33 }
 0xdac   :  { %1765 = vmatpush3.msra.mxu0 %v1079_v17 }
 0xdad   :  { %1766 = vmatprep.subr.mxu0 %v1966_v33 }
 0xdae   :  { %1767 = vmatpush3.msra.mxu0 %v1078_v19 }
 0xdaf   :  { %1768 = vmatprep.subr.mxu0 %v1966_v33 }
 0xdb0   :  { %1769 = vmatpush3.msra.mxu0 %v1077_v21 }
 0xdb1   :  { %1770 = vmatprep.subr.mxu0 %v1966_v33 }
 0xdb2   :  { %1771 = vmatpush3.msra.mxu0 %v1076_v31 }
 0xdb3   :  { %1801 = vmatprep.subr.mxu0 %v1966_v33 }
 0xe63   :  { %v929_v16 = vpop.f32.mrf.mxu0 }
 0xe64   :  { %v934_v20 = vadd.f32 %v929_v16, %v198_v59 }
 0xe65   :  { %v931_v22 = vpop.f32.mrf.mxu0 }
 0xe66   :  { %v935_v24 = vadd.f32 %v931_v22, %v200_v18  ;;  %v1701_v28 = vmul.f32 -1.442695, %v934_v20  ;;  %v1241_v18 = vld [vmem:[%s2597_s3 + $0x78] sm:$0xff]  ;;  %v1240_v22 = vld [vmem:[%s2597_s3 + $0x70] sm:$0xff] }
 0xe68   :  { %1922 = vtanh.f32 %v935_v24  ;;  %v1702_v44 = vmul.f32 -1.442695, %v935_v24  ;;  %v1239_v24 = vld [vmem:[%s2597_s3 + $0x68] sm:$0xff] }
 0xe69   :  { %1924 = vpow2.f32 %v1701_v28  ;;  %v1328_v28 = vld [vmem:[%s2597_s3 + $0xb8] sm:$0xff] }
 0xe75   :  { %v1923_v26 = vpop.eup %1922 }
 0xe76   :  { %951 = vrot.lane.b32.xlu0 %v1923_v26, %s1967_s20  ;;  %v1925_v30 = vpop.eup %1924  ;;  %v1238_v26 = vld [vmem:[%s2597_s3 + $0x60] sm:$0xff] }
 0xe77   :  { %v942_v32 = vadd.f32 1.0, %v1925_v30  ;;  %v1327_v30 = vld [vmem:[%s2597_s3 + $0xb0] sm:$0xff] }
 0xe79   :  { %1926 = vrcp.f32 %v942_v32  ;;  %v1326_v32 = vld [vmem:[%s2597_s3 + $0xa8] sm:$0xff] }
 0xe86   :  { %v1927_v36 = vpop.eup %1926 }
 0xe87   :  { %v949_v0 = vmul.f32 %v1927_v36, %v853_v62  ;;  %v1243_v62 = vld [vmem:[%s2597_s3 + $0x88] sm:$0xff] }
 0xee8   :  { %v952_v38 = vpop.permute.xlu0 %951 }
 0xee9   :  { %v954_v41 = vmul.f32 %v1927_v36, %v952_v38  ;;  %v1325_v36 = vld [vmem:[%s2597_s3 + $0xa0] sm:$0xff]  ;;  %v1234_v38 = vsub.s32 1, %v2196_v35 }
 0xeeb   :  { %956 = vrot.lane.b32.xlu1 %v954_v41, %s1967_s20  ;;  %v1235_v41 = vrot.slane %v2202_v37, %v1234_v38 }
 0xf5d   :  { %v957_v42 = vpop.permute.xlu1 %956 }
 0xf5e   :  { %v2398_v2 = vadd.f32 %v957_v42, %v949_v0 }
 0xf60   :  { %1928 = vtanh.f32 %v2398_v2 }
 0xf61   :  { %1930 = vpow2.f32 %v1702_v44 }
 0xf6d   :  { %v1929_v43 = vpop.eup %1928 }
 0xf6e   :  { %962 = vrot.lane.b32.xlu0 %v1929_v43, %s1967_s20  ;;  %v1931_v45 = vpop.eup %1930 }
 0xf6f   :  { %v943_v46 = vadd.f32 1.0, %v1931_v45  ;;  %v1324_v45 = vld [vmem:[%s2597_s3 + $0x98] sm:$0xff] }
 0xf71   :  { %1932 = vrcp.f32 %v943_v46  ;;  %v1323_v46 = vld [vmem:[%s2597_s3 + $0x90] sm:$0xff] }
 0xf7e   :  { %v1933_v47 = vpop.eup %1932 }
 0xfe0   :  { %v963_v49 = vpop.permute.xlu0 %962 }
 0xfe1   :  { %v965_v48 = vmul.f32 %v1933_v47, %v963_v49  ;;  %v1407_v47 = vld [vmem:[%s2597_s3 + $0xc8] sm:$0xff]  ;;  %v1246_v49 = vsub.s32 2, %v2196_v35 }
 0xfe3   :  { %1703 = vmatmul.mubr.msk.f32.vlgmr.msra.gmra.mxu1 %vm70_vm0, %v965_v48  ;;  %v1247_v48 = vrot.slane %v2202_v37, %v1246_v49  ;;  %v1489_v37 = vld [vmem:[%s2597_s3 + $0xe8] sm:$0xff] }
 0xfe4   :  { %1783 = vmatprep.mubr.msk.f32.mxu1 %vm1968_vm1, %v1966_v33  ;;  %1776 = vmatpush3.msra.mxu1 %v1075_v5  ;;  %v1493_v5 = vld [vmem:[%s2597_s3 + $0x108] sm:$0xff] }
 0xfe5   :  { %1777 = vmatprep.subr.mxu1 %v1966_v33 }
 0xfe6   :  { %1778 = vmatpush3.msra.mxu1 %v1074_v9 }
 0xfe7   :  { %1779 = vmatprep.subr.mxu1 %v1966_v33 }
 0xfe8   :  { %1780 = vmatpush3.msra.mxu1 %v1073_v11 }
 0xfe9   :  { %1781 = vmatprep.subr.mxu1 %v1966_v33 }
 0xfea   :  { %1782 = vmatpush3.msra.mxu1 %v1072_v15  ;;  %v1410_v15 = vsub.s32 4, %v2196_v35 }
 0xfeb   :  { %1786 = vmatprep.subr.mxu1 %v1966_v33  ;;  %1784 = vmatmul.mubr.msk.f32.vlgmr.msra.gmra.mxu1 %vm1158_vm2, %v1084_v29 }
 0xfec   :  { %1798 = vmatprep.mubr.msk.f32.mxu1 %vm1968_vm1, %v1966_v33  ;;  %1787 = vmatpush3.msra.mxu1 %v1243_v62 }
 0xfed   :  { %1788 = vmatprep.subr.mxu1 %v1966_v33 }
 0xfee   :  { %1789 = vmatpush3.msra.mxu1 %v1242_v8 }
 0xfef   :  { %1790 = vmatprep.subr.mxu1 %v1966_v33 }
 0xff0   :  { %1791 = vmatpush3.msra.mxu1 %v1241_v18 }
 0xff1   :  { %1792 = vmatprep.subr.mxu1 %v1966_v33 }
 0xff2   :  { %1793 = vmatpush3.msra.mxu1 %v1240_v22 }
 0xff3   :  { %1794 = vmatprep.subr.mxu1 %v1966_v33 }
 0xff4   :  { %1795 = vmatpush3.msra.mxu1 %v1239_v24 }
 0xff5   :  { %1796 = vmatprep.subr.mxu1 %v1966_v33 }
 0xff6   :  { %1797 = vmatpush3.msra.mxu1 %v1238_v26 }
 0xff7   :  { %1816 = vmatprep.subr.mxu1 %v1966_v33 }
0x10a3   :  { %v1035_v50 = vpop.f32.mrf.mxu1 }
0x10a4   :  { %v1040_v51 = vadd.f32 %v1035_v50, %v204_v60 }
0x10a5   :  { %v1037_v52 = vpop.f32.mrf.mxu1 }
0x10a6   :  { %v2407_v53 = vadd.f32 %v1037_v52, %v206_v61  ;;  %v1704_v55 = vmul.f32 -1.442695, %v1040_v51  ;;  %v1491_v52 = vld [vmem:[%s2597_s3 + $0xf8] sm:$0xff] }
0x10a8   :  { %1934 = vtanh.f32 %v2407_v53  ;;  %v1705_v10 = vmul.f32 -1.442695, %v2407_v53  ;;  %v1490_v53 = vld [vmem:[%s2597_s3 + $0xf0] sm:$0xff] }
0x10a9   :  { %1936 = vpow2.f32 %v1704_v55  ;;  %v1487_v55 = vld [vmem:[%s2597_s3 + $0xd8] sm:$0xff] }
0x10ab   :  { %v1228_v16 = vpop.f32.mrf.mxu1 }
0x10ad   :  { %v1785_v20 = vpop.f32.mrf.mxu1 }
0x10b5   :  { %v1935_v54 = vpop.eup %1934 }
0x10b6   :  { %1057 = vrot.lane.b32.xlu1 %v1935_v54, %s1967_s20  ;;  %v1937_v56 = vpop.eup %1936  ;;  %v1488_v54 = vld [vmem:[%s2597_s3 + $0xe0] sm:$0xff] }
0x10b7   :  { %v1048_v57 = vadd.f32 1.0, %v1937_v56  ;;  %v1486_v56 = vld [vmem:[%s2597_s3 + $0xd0] sm:$0xff] }
0x10b9   :  { %1938 = vrcp.f32 %v1048_v57  ;;  %v1406_v57 = vld [vmem:[%s2597_s3 + $0xc0] sm:$0xff]  ;;  %s1648_s3 = sld [smem:[#allocation2]] }
0x10c6   :  { %v1939_v3 = vpop.eup %1938 }
0x10c7   :  { %v1055_v23 = vmul.f32 %v1939_v3, %v2398_v2 }
0x1128   :  { %v1058_v39 = vpop.permute.xlu1 %1057 }
0x1129   :  { %v1060_v4 = vmul.f32 %v1939_v3, %v1058_v39  ;;  %v1331_v3 = vsub.s32 3, %v2196_v35  ;;  %v1950_v39 = vld [vmem:[%s2598_s4] sm:$0xff] }
0x112a   :  { %v1411_v17 = vrot.slane %v1950_v39, %v1410_v15 }
0x112b   :  { %1062 = vrot.lane.b32.xlu0 %v1060_v4, %s1967_s20  ;;  %v1332_v4 = vrot.slane %v1950_v39, %v1331_v3 }
0x119d   :  { %v1063_v25 = vpop.permute.xlu0 %1062 }
0x119e   :  { %v1065_v27 = vadd.f32 %v1063_v25, %v1055_v23  ;;  %v1639_v25 = vsub.s32 5, %v2196_v35 }
0x11a0   :  { %1940 = vtanh.f32 %v1065_v27 }
0x11a1   :  { %1942 = vpow2.f32 %v1705_v10 }
0x11ad   :  { %v1941_v63 = vpop.eup %1940 }
0x11ae   :  { %1068 = vrot.lane.b32.xlu1 %v1941_v63, %s1967_s20  ;;  %v1943_v12 = vpop.eup %1942 }
0x11af   :  { %v1049_v1 = vadd.f32 1.0, %v1943_v12  ;;  %v1649_v12 = vstv %s1648_s3 }
0x11b1   :  { %1944 = vrcp.f32 %v1049_v1  ;;  %v1655_v1 = vand.u32 127, %v62_v34 }
0x11b3   :  { %vm1656_vm5 = vcmp.eq.s32.totalorder %v1655_v1, 3 }
0x11be   :  { %v1945_v58 = vpop.eup %1944 }
0x1220   :  { %v1069_v14 = vpop.permute.xlu1 %1068 }
0x1221   :  { %v1071_v59 = vmul.f32 %v1945_v58, %v1069_v14  ;;  %v1652_v14 = vstv %s1714_s27 }
0x1223   :  { %1773 = vmatmul.mubr.msk.f32.vlgmr.msra.gmra.mxu0 %vm70_vm0, %v1071_v59 }
0x1224   :  { %1813 = vmatprep.mubr.msk.f32.mxu0 %vm1968_vm1, %v1966_v33  ;;  %1802 = vmatpush3.msra.mxu0 %v1328_v28 }
0x1225   :  { %1803 = vmatprep.subr.mxu0 %v1966_v33 }
0x1226   :  { %1804 = vmatpush3.msra.mxu0 %v1327_v30 }
0x1227   :  { %1805 = vmatprep.subr.mxu0 %v1966_v33 }
0x1228   :  { %1806 = vmatpush3.msra.mxu0 %v1326_v32 }
0x1229   :  { %1807 = vmatprep.subr.mxu0 %v1966_v33 }
0x122a   :  { %1808 = vmatpush3.msra.mxu0 %v1325_v36 }
0x122b   :  { %1809 = vmatprep.subr.mxu0 %v1966_v33 }
0x122c   :  { %1810 = vmatpush3.msra.mxu0 %v1324_v45 }
0x122d   :  { %1811 = vmatprep.subr.mxu0 %v1966_v33 }
0x122e   :  { %1812 = vmatpush3.msra.mxu0 %v1323_v46 }
0x122f   :  { %1830 = vmatprep.subr.mxu0 %v1966_v33 }
0x12e3   :  { %v1154_v0 = vpop.f32.mrf.mxu0 }
0x12e4   :  { %v1229_v42 = vadd.f32 %v1228_v16, %v1154_v0 }
0x12e5   :  { %v1774_v2 = vpop.f32.mrf.mxu0 }
0x12e6   :  { %v1236_v43 = vadd.f32 %v1235_v41, %v1229_v42 }
0x12e8   :  { %v1237_v44 = vmax.f32 %v1236_v43, 0.0 }
0x12ea   :  { %1799 = vmatmul.mubr.msk.f32.vlgmr.msra.gmra.mxu1 %vm1248_vm3, %v1237_v44 }
0x12eb   :  { %1820 = vmatprep.mubr.msk.f32.mxu1 %vm1968_vm1, %v1966_v33  ;;  %1817 = vmatpush3.msra.mxu1 %v1407_v47 }
0x12ec   :  { %1818 = vmatprep.subr.mxu1 %v1966_v33 }
0x12ed   :  { %1819 = vmatpush3.msra.mxu1 %v1406_v57 }
0x12ee   :  { %1823 = vmatprep.subr.mxu1 %v1966_v33 }
0x13aa   :  { %v1318_v60 = vpop.f32.mrf.mxu1 }
0x13ab   :  { %v1319_v50 = vadd.f32 %v1318_v60, %v1247_v48 }
0x13ac   :  { %v1800_v61 = vpop.f32.mrf.mxu1 }
0x13ad   :  { %v2534_v51 = vmax.f32 %v1319_v50, 0.0 }
0x13af   :  { %1814 = vmatmul.mubr.msk.f32.vlgmr.msra.gmra.mxu0 %vm1248_vm3, %v2534_v51 }
0x13b0   :  { %1831 = vmatpush3.msra.mxu0 %v1491_v52  ;;  %1842 = vmatprep.mubr.msk.f32.mxu0 %vm1968_vm1, %v1966_v33 }
0x13b1   :  { %1832 = vmatprep.subr.mxu0 %v1966_v33 }
0x13b2   :  { %1833 = vmatpush3.msra.mxu0 %v1490_v53 }
0x13b3   :  { %1834 = vmatprep.subr.mxu0 %v1966_v33 }
0x13b4   :  { %1835 = vmatpush3.msra.mxu0 %v1489_v37 }
0x13b5   :  { %1836 = vmatprep.subr.mxu0 %v1966_v33 }
0x13b6   :  { %1837 = vmatpush3.msra.mxu0 %v1488_v54 }
0x13b7   :  { %1838 = vmatprep.subr.mxu0 %v1966_v33 }
0x13b8   :  { %1839 = vmatpush3.msra.mxu0 %v1487_v55 }
0x13b9   :  { %1840 = vmatprep.subr.mxu0 %v1966_v33 }
0x13ba   :  { %1841 = vmatpush3.msra.mxu0 %v1486_v56 }
0x13bb   :  { %1843 = vmatmul.mubr.msk.f32.vlgmr.msra.gmra.mxu0 %vm1248_vm3, %v2534_v51 }
0x146f   :  { %v1402_v40 = vpop.f32.mrf.mxu0 }
0x1470   :  { %v1403_v6 = vadd.f32 %v1402_v40, %v1332_v4 }
0x1471   :  { %v1815_v7 = vpop.f32.mrf.mxu0 }
0x1472   :  { %1821 = vmatmul.mubr.msk.f32.vlgmr.msra.gmra.mxu1 %vm1412_vm4, %v1403_v6 }
0x1473   :  { %1824 = vmatpush3.msra.mxu1 %v1493_v5  ;;  %1827 = vmatprep.mubr.msk.f32.mxu1 %vm1968_vm1, %v1966_v33 }
0x1474   :  { %1825 = vmatprep.subr.mxu1 %v1966_v33  ;;  %v1640_v33 = vrot.slane %v1950_v39, %v1639_v25 }
0x1475   :  { %1826 = vmatpush3.msra.mxu1 %v1492_v13 }
0x147b   :  { %v1633_v9 = vpop.f32.mrf.mxu0 }
0x147d   :  { %v1844_v11 = vpop.f32.mrf.mxu0 }
0x1532   :  { %v1482_v19 = vpop.f32.mrf.mxu1 }
0x1533   :  { %v1483_v21 = vadd.f32 %v1482_v19, %v1411_v17 }
0x1534   :  { %v1822_v23 = vpop.f32.mrf.mxu1 }
0x1535   :  { %1658 = vrot.lane.b32.xlu0 %v1483_v21, %s1969_s26  ;;  %1828 = vmatmul.mubr.msk.f32.vlgmr.msra.gmra.mxu1 %vm1412_vm4, %v1483_v21 }
0x15a7   :  { %v1659_v18 = vpop.permute.xlu0 %1658 }
0x15a8   :  { %v1665_v20 = vsel %vm1248_vm3, %v2534_v51, %v1659_v18 }
0x15f5   :  { %v1563_v27 = vpop.f32.mrf.mxu1 }
0x15f6   :  { %v1634_v29 = vadd.f32 %v1633_v9, %v1563_v27 }
0x15f7   :  { %v1829_v31 = vpop.f32.mrf.mxu1 }
0x15f8   :  { %v1641_v62 = vadd.f32 %v1640_v33, %v1634_v29 }
0x15fa   :  { %v1713_v63 = vmul.f32 -1.442695, %v1641_v62 }
0x15fc   :  { %1946 = vpow2.f32 %v1713_v63 }
0x1609   :  { %v1947_v8 = vpop.eup %1946 }
0x160a   :  { %v1645_v10 = vadd.f32 1.0, %v1947_v8 }
0x160c   :  { %1948 = vrcp.f32 %v1645_v10 }
0x1619   :  { %v1949_v58 = vpop.eup %1948 }
0x161a   :  { %v1650_v59 = vmul.f32 %v1949_v58, %v1649_v12 }
0x161c   :  { %v1653_v35 = vadd.f32 %v1652_v14, %v1650_v59 }
0x161e   :  { %v1657_v16 = vsel %vm1656_vm5, %v1653_v35, %v1641_v62 }
0x161f   :  { %1662 = vrot.lane.b32.xlu1 %v1657_v16, %s1967_s20 }
0x1691   :  { %v1663_v22 = vpop.permute.xlu1 %1662 }
0x1692   :  { %v1666_v24 = vsel %vm70_vm0, %v1665_v20, %v1663_v22 }
0x1693   :  { %v1668_v26 = vsel %vm1667_vm6, %v1666_v24, 0.0 }
0x1694   :  { %1669 = vst [vmem:[%s2600_s6] sm:$0xff] %v1668_v26 }
0x1695   :  { %1674 = vsyncpa [#allocation3], 1 }

</bundles_post_ra>
